<compile_context>
chip_gen: v6e
topology: v6e:2x2x1
jax: 0.10.0
libtpu: 0.0.40
codegen_flags: <defaults>
</compile_context>

<pallas_src>
import functools

import jax
import jax.numpy as jnp
from jax.experimental import pallas as pl
from jax.experimental.pallas import tpu as pltpu


# ------------------------------ small helpers -------------------------------


def _round_up(x, m):
    return (x + m - 1) // m * m


def _pick_tile(size, align, max_tile):
    # align divides max_tile; padded size will be a multiple of the result.
    if size <= max_tile:
        return _round_up(size, align)
    return max_tile


# ----------------------------- LayerNorm kernel -----------------------------


def _layernorm_kernel(x_ref, g_ref, b_ref, o_ref):
    # x_ref: (B, N) — normalize each row over all N features (matches
    # nn.LayerNorm((2, 95, L)) which normalizes over the last 3 dims).
    x = x_ref[...]
    mean = jnp.mean(x, axis=-1, keepdims=True)
    xc = x - mean
    var = jnp.mean(xc * xc, axis=-1, keepdims=True)       # biased, like PyTorch
    inv = jax.lax.rsqrt(var + 1e-5)
    o_ref[...] = xc * inv * g_ref[...] + b_ref[...]


def layernorm_pallas(x2d, gamma2d, beta2d):
    B, N = x2d.shape
    est = (3 * B * N + 4 * N) * 4 * 2  # everything double-buffered, f32
    return pl.pallas_call(
        _layernorm_kernel,
        out_shape=jax.ShapeDtypeStruct((B, N), x2d.dtype),
        in_specs=[
            pl.BlockSpec((B, N), lambda: (0, 0)),
            pl.BlockSpec((1, N), lambda: (0, 0)),
            pl.BlockSpec((1, N), lambda: (0, 0)),
        ],
        out_specs=pl.BlockSpec((B, N), lambda: (0, 0)),
        compiler_params=pltpu.CompilerParams(
            vmem_limit_bytes=int(max(4 * 1024 * 1024, est))),
    )(x2d, gamma2d, beta2d)


# ------------------- tiled matmul + bias + activation kernel ----------------


def _matmul_bias_act_kernel(a_ref, w_ref, b_ref, o_ref, acc_ref, *, activation):
    @pl.when(pl.program_id(2) == 0)
    def _():
        acc_ref[...] = jnp.zeros_like(acc_ref)

    acc_ref[...] += jnp.dot(a_ref[...], w_ref[...],
                            preferred_element_type=jnp.float32)

    @pl.when(pl.program_id(2) == pl.num_programs(2) - 1)
    def _():
        acc = acc_ref[...] + b_ref[...].astype(jnp.float32)
        if activation == "relu":
            acc = jnp.maximum(acc, 0.0)
        elif activation == "sigmoid":
            acc = jax.nn.sigmoid(acc)
        o_ref[...] = acc.astype(o_ref.dtype)


def matmul_bias_act(a, w, bias, *, activation, bias_axis, out_dtype):
    """out = act(a @ w + bias).  a:(M,K), w:(K,N), bias broadcast on axis
    `bias_axis` (0 = per-row, 1 = per-column).  bf16 operands, f32 accumulate,
    tiled (M,N,K) grid with accumulator scratch."""
    M, K = a.shape
    Kw, N = w.shape
    assert K == Kw
    a = a.astype(jnp.bfloat16)
    w = w.astype(jnp.bfloat16)
    bias = bias.astype(jnp.float32)

    tm = _pick_tile(M, 16, 256)      # 16-sublane aligned for bf16 packing
    tn = _pick_tile(N, 128, 512)     # lane-dense output (multiple of 128)
    tk = _pick_tile(K, 128, 512)     # contraction padded to 128
    Mp, Np, Kp = _round_up(M, tm), _round_up(N, tn), _round_up(K, tk)

    a_p = jnp.pad(a, ((0, Mp - M), (0, Kp - K))) if (Mp > M or Kp > K) else a
    w_p = jnp.pad(w, ((0, Kp - K), (0, Np - N))) if (Kp > K or Np > N) else w
    if bias_axis == 0:
        b_p = jnp.pad(bias, (0, Mp - M)).reshape(Mp, 1)
        b_spec = pl.BlockSpec((tm, 1), lambda i, j, k: (i, 0))
        b_bytes = tm * 4
    else:
        b_p = jnp.pad(bias, (0, Np - N)).reshape(1, Np)
        b_spec = pl.BlockSpec((1, tn), lambda i, j, k: (0, j))
        b_bytes = tn * 4

    grid = (Mp // tm, Np // tn, Kp // tk)

    # VMEM budget from the actual tiles (inputs/outputs double-buffered) + acc.
    out_isize = jnp.dtype(out_dtype).itemsize
    est = (2 * (tm * tk * 2 + tk * tn * 2 + b_bytes + tm * tn * out_isize)
           + tm * tn * 4)
    vmem_limit = int(min(100 * 1024 * 1024, max(4 * 1024 * 1024, 2 * est)))

    kern = functools.partial(_matmul_bias_act_kernel, activation=activation)
    out_p = pl.pallas_call(
        kern,
        out_shape=jax.ShapeDtypeStruct((Mp, Np), out_dtype),
        grid_spec=pltpu.PrefetchScalarGridSpec(
            num_scalar_prefetch=0,
            grid=grid,
            in_specs=[
                pl.BlockSpec((tm, tk), lambda i, j, k: (i, k)),
                pl.BlockSpec((tk, tn), lambda i, j, k: (k, j)),
                b_spec,
            ],
            out_specs=pl.BlockSpec((tm, tn), lambda i, j, k: (i, j)),
            scratch_shapes=[pltpu.VMEM((tm, tn), jnp.float32)],
        ),
        compiler_params=pltpu.CompilerParams(
            dimension_semantics=("parallel", "parallel", "arbitrary"),
            vmem_limit_bytes=vmem_limit,
        ),
    )(a_p, w_p, b_p)
    return out_p[:M, :N]


# --------------------- Conv2d + ReLU (channels-first im2col) ----------------


def conv2d_relu_cf(x_cf, w_flat, bias, ksize, stride):
    """x_cf: (Cin, B, H, W); w_flat: (Cout, Cin*K*K) — PyTorch
    weight.reshape(Cout, -1) flattening (cin, kh, kw); bias: (Cout,).

    Valid padding, square kernel/stride, identical to nn.Conv2d defaults.
    Patch extraction is glue (strided slices); the matmul runs in the tiled
    Pallas kernel with the large B*Ho*Wo axis on lanes.
    Returns (Cout, B, Ho, Wo)."""
    Cin, B, H, W = x_cf.shape
    Cout = w_flat.shape[0]
    K = ksize
    Ho = (H - K) // stride + 1
    Wo = (W - K) // stride + 1

    cols = []
    for kh in range(K):
        for kw in range(K):
            cols.append(
                x_cf[:, :, kh:kh + stride * Ho:stride, kw:kw + stride * Wo:stride]
            )  # (Cin, B, Ho, Wo)
    # (Cin, K*K, B, Ho, Wo): row order (cin, kh, kw) matches w_flat columns.
    patches = jnp.stack(cols, axis=1).reshape(Cin * K * K, B * Ho * Wo)

    out = matmul_bias_act(w_flat, patches, bias, activation="relu",
                          bias_axis=0, out_dtype=jnp.bfloat16)  # (Cout, B*Ho*Wo)
    return out.reshape(Cout, B, Ho, Wo)


# ------------------------------ Model wrapper --------------------------------


N_MELS = 95
IN_CHANNELS = 2
NUM_LABELS = 10  # len(LABELS_NAMES) — undefined in source, picked here.


def init_params(key, embedding_dim, input_length, conv_layers_count,
                conv_kernel_size, conv_stride):
    """Parameters in PyTorch-native shapes/dtypes."""
    keys = jax.random.split(key, 4 + 2 * conv_layers_count)
    params = {}

    ln_shape = (IN_CHANNELS, N_MELS, input_length)
    params["ln_gamma"] = jnp.ones(ln_shape, jnp.float32)
    params["ln_beta"] = jnp.zeros(ln_shape, jnp.float32)

    # upsampling: Conv2d(2, embedding_dim, 3, stride=1)
    params["up_w"] = 0.05 * jax.random.normal(
        keys[0], (embedding_dim, IN_CHANNELS, 3, 3), jnp.float32)
    params["up_b"] = 0.05 * jax.random.normal(
        keys[1], (embedding_dim,), jnp.float32)

    H = N_MELS - 3 + 1
    W = input_length - 3 + 1

    convs = []
    ed = embedding_dim
    for i in range(conv_layers_count):
        w = 0.05 * jax.random.normal(
            keys[2 + 2 * i], (ed * 2, ed, conv_kernel_size, conv_kernel_size),
            jnp.float32)
        b = 0.05 * jax.random.normal(keys[3 + 2 * i], (ed * 2,), jnp.float32)
        convs.append((w, b))
        ed = ed * 2
        H = (H - conv_kernel_size) // conv_stride + 1
        W = (W - conv_kernel_size) // conv_stride + 1
    params["convs"] = convs

    flat_features = ed * H * W
    # nn.Linear weight is (out_features, in_features).
    params["cls_w"] = 0.05 * jax.random.normal(
        keys[-2], (NUM_LABELS, flat_features), jnp.float32)
    params["cls_b"] = 0.05 * jax.random.normal(
        keys[-1], (NUM_LABELS,), jnp.float32)
    return params


def prepare_params(params):
    """One-time conversion to kernel-friendly layouts (bf16 matmul weights)."""
    prep = {}
    prep["ln_gamma"] = params["ln_gamma"].reshape(1, -1)
    prep["ln_beta"] = params["ln_beta"].reshape(1, -1)

    def prep_conv(w, b):
        cout = w.shape[0]
        return (w.reshape(cout, -1).astype(jnp.bfloat16),   # (Cout, Cin*K*K)
                b.astype(jnp.float32))

    prep["up"] = prep_conv(params["up_w"], params["up_b"])
    prep["convs"] = [prep_conv(w, b) for (w, b) in params["convs"]]
    prep["cls_w"] = params["cls_w"].T.astype(jnp.bfloat16)   # (flat, L)
    prep["cls_b"] = params["cls_b"].astype(jnp.float32)
    return prep


def forward(params, x, conv_kernel_size, conv_stride):
    bs, n_channels, n_mels, length = x.shape

    # LayerNorm over (C, H, W) per sample (f32).
    x2d = x.reshape(bs, n_channels * n_mels * length)
    x2d = layernorm_pallas(x2d, params["ln_gamma"], params["ln_beta"])

    # Go channels-first (C, B, H, W) once; all convs stay in this layout.
    x_cf = x2d.reshape(bs, n_channels, n_mels, length).transpose(1, 0, 2, 3)

    # upsampling: Conv2d + ReLU (kernel 3, stride 1).
    w2, b = params["up"]
    x_cf = conv2d_relu_cf(x_cf, w2, b, 3, 1)

    # conv stack: [Dropout2d (identity in eval), Conv2d, ReLU] * N
    # TODO(synk): Dropout2d treated as inference-mode identity.
    for (w2, b) in params["convs"]:
        x_cf = conv2d_relu_cf(x_cf, w2, b, conv_kernel_size, conv_stride)

    # classifier: per-sample flatten in PyTorch (C, H, W) order, then
    # Linear + Sigmoid (K tiled over the grid with an f32 accumulator).
    a = x_cf.transpose(1, 0, 2, 3).reshape(bs, -1)
    y = matmul_bias_act(a, params["cls_w"], params["cls_b"],
                        activation="sigmoid", bias_axis=1,
                        out_dtype=jnp.float32)
    return y


forward_jit = jax.jit(forward, static_argnums=(2, 3))


# ----------------------------------- main ------------------------------------


if __name__ == "__main__":
    embedding_dim = 8
    input_length = 16
    conv_layers_count = 2
    conv_kernel_size = 3
    conv_stride = 2
    bs = 2

    key = jax.random.PRNGKey(0)
    pkey, xkey = jax.random.split(key)

    params = init_params(pkey, embedding_dim, input_length, conv_layers_count,
                         conv_kernel_size, conv_stride)
    params = prepare_params(params)
    x = jax.random.normal(
        xkey, (bs, IN_CHANNELS, N_MELS, input_length), jnp.float32)

    y = forward_jit(params, x, conv_kernel_size, conv_stride)
    y = jax.block_until_ready(y)

    assert y.shape == (bs, NUM_LABELS), y.shape
    assert bool(jnp.all(jnp.isfinite(y)))
    assert bool(jnp.all((y >= 0.0) & (y <= 1.0)))  # sigmoid output range
    print("KERNEL_OK")
</pallas_src>

<mosaic_0001>
module attributes {stable_mosaic.version = 11 : i64} {
  func.func @_layernorm_kernel(%arg0: memref<2x3040xf32, #tpu.memory_space<vmem>>, %arg1: memref<1x3040xf32, #tpu.memory_space<vmem>>, %arg2: memref<1x3040xf32, #tpu.memory_space<vmem>>, %arg3: memref<2x3040xf32, #tpu.memory_space<vmem>>) attributes {dimension_semantics = [], scalar_prefetch = 0 : i64, scratch_operands = 0 : i64, tpu.core_type = #tpu.core_type<tc>} {
    %c0 = arith.constant 0 : index
    %c0_0 = arith.constant 0 : index
    %0 = vector.load %arg0[%c0, %c0_0] : memref<2x3040xf32, #tpu.memory_space<vmem>>, vector<2x3040xf32>
    %cst = arith.constant dense<0.000000e+00> : vector<2xf32>
    %1 = vector.multi_reduction <add>, %0, %cst [1] : vector<2x3040xf32> to vector<2xf32>
    %2 = vector.shape_cast %1 : vector<2xf32> to vector<2x1xf32>
    %cst_1 = arith.constant 3.040000e+03 : f32
    %3 = vector.broadcast %cst_1 : f32 to vector<2x1xf32>
    %4 = arith.divf %2, %3 : vector<2x1xf32>
    %5 = vector.broadcast %4 : vector<2x1xf32> to vector<2x3040xf32>
    %6 = arith.subf %0, %5 : vector<2x3040xf32>
    %7 = arith.mulf %6, %6 : vector<2x3040xf32>
    %cst_2 = arith.constant dense<0.000000e+00> : vector<2xf32>
    %8 = vector.multi_reduction <add>, %7, %cst_2 [1] : vector<2x3040xf32> to vector<2xf32>
    %9 = vector.shape_cast %8 : vector<2xf32> to vector<2x1xf32>
    %cst_3 = arith.constant 3.040000e+03 : f32
    %10 = vector.broadcast %cst_3 : f32 to vector<2x1xf32>
    %11 = arith.divf %9, %10 : vector<2x1xf32>
    %cst_4 = arith.constant 9.99999974E-6 : f32
    %12 = vector.broadcast %cst_4 : f32 to vector<2x1xf32>
    %13 = arith.addf %11, %12 : vector<2x1xf32>
    %14 = math.rsqrt %13 : vector<2x1xf32>
    %15 = vector.broadcast %14 : vector<2x1xf32> to vector<2x3040xf32>
    %16 = arith.mulf %6, %15 : vector<2x3040xf32>
    %c0_5 = arith.constant 0 : index
    %c0_6 = arith.constant 0 : index
    %17 = vector.load %arg1[%c0_5, %c0_6] : memref<1x3040xf32, #tpu.memory_space<vmem>>, vector<1x3040xf32>
    %18 = vector.broadcast %17 : vector<1x3040xf32> to vector<2x3040xf32>
    %19 = arith.mulf %16, %18 : vector<2x3040xf32>
    %c0_7 = arith.constant 0 : index
    %c0_8 = arith.constant 0 : index
    %20 = vector.load %arg2[%c0_7, %c0_8] : memref<1x3040xf32, #tpu.memory_space<vmem>>, vector<1x3040xf32>
    %21 = vector.broadcast %20 : vector<1x3040xf32> to vector<2x3040xf32>
    %22 = arith.addf %19, %21 : vector<2x3040xf32>
    %c0_9 = arith.constant 0 : index
    %c0_10 = arith.constant 0 : index
    %23 = vector.load %arg3[%c0_9, %c0_10] : memref<2x3040xf32, #tpu.memory_space<vmem>>, vector<2x3040xf32>
    tpu.vector_store %arg3[%c0_9, %c0_10], %22 {strides = array<i32>} : memref<2x3040xf32, #tpu.memory_space<vmem>>, vector<2x3040xf32>,
    return
  }
}

module attributes {stable_mosaic.version = 11 : i64} {
  func.func @_matmul_bias_act_kernel(%arg0: i32, %arg1: i32, %arg2: i32, %arg3: memref<16x128xbf16, #tpu.memory_space<vmem>>, %arg4: memref<128x512xbf16, #tpu.memory_space<vmem>>, %arg5: memref<16x1xf32, #tpu.memory_space<vmem>>, %arg6: memref<16x512xbf16, #tpu.memory_space<vmem>>, %arg7: memref<16x512xf32, #tpu.memory_space<vmem>>) attributes {dimension_semantics = [#tpu.dimension_semantics<parallel>, #tpu.dimension_semantics<parallel>, #tpu.dimension_semantics<arbitrary>], iteration_bounds = array<i64: 1, 6, 1>, scalar_prefetch = 0 : i64, scratch_operands = 1 : i64, tpu.core_type = #tpu.core_type<tc>, window_params = [{transform_indices = @transform_0, window_bounds = array<i64: 16, 128>}, {transform_indices = @transform_1, window_bounds = array<i64: 128, 512>}, {transform_indices = @transform_2, window_bounds = array<i64: 16, 1>}, {transform_indices = @transform_3, window_bounds = array<i64: 16, 512>}]} {
    %c0_i32 = arith.constant 0 : i32
    %0 = arith.cmpi eq, %arg2, %c0_i32 : i32
    %1 = arith.extui %0 : i1 to i32
    %c0_i32_0 = arith.constant 0 : i32
    %2 = arith.cmpi ne, %1, %c0_i32_0 : i32
    scf.if %2 {
      %cst_10 = arith.constant 0.000000e+00 : f32
      %12 = vector.broadcast %cst_10 : f32 to vector<16x512xf32>
      %c0_11 = arith.constant 0 : index
      %c0_12 = arith.constant 0 : index
      %13 = vector.load %arg7[%c0_11, %c0_12] : memref<16x512xf32, #tpu.memory_space<vmem>>, vector<16x512xf32>
      tpu.vector_store %arg7[%c0_11, %c0_12], %12 {strides = array<i32>} : memref<16x512xf32, #tpu.memory_space<vmem>>, vector<16x512xf32>,
    } else {
    }
    %c0 = arith.constant 0 : index
    %c0_1 = arith.constant 0 : index
    %3 = vector.load %arg7[%c0, %c0_1] : memref<16x512xf32, #tpu.memory_space<vmem>>, vector<16x512xf32>
    %c0_2 = arith.constant 0 : index
    %c0_3 = arith.constant 0 : index
    %4 = vector.load %arg3[%c0_2, %c0_3] : memref<16x128xbf16, #tpu.memory_space<vmem>>, vector<16x128xbf16>
    %c0_4 = arith.constant 0 : index
    %c0_5 = arith.constant 0 : index
    %5 = vector.load %arg4[%c0_4, %c0_5] : memref<128x512xbf16, #tpu.memory_space<vmem>>, vector<128x512xbf16>
    %cst = arith.constant dense<0.000000e+00> : vector<16x512xf32>
    %6 = tpu.matmul %4, %5, %cst {dimension_numbers = #tpu.dot_dimension_numbers<[1], [0], [0], [1], [0, 0, 1, 1], [], []>} : vector<16x128xbf16>, vector<128x512xbf16>, vector<16x512xf32> -> vector<16x512xf32>
    %7 = arith.addf %3, %6 : vector<16x512xf32>
    %c0_6 = arith.constant 0 : index
    %c0_7 = arith.constant 0 : index
    %8 = vector.load %arg7[%c0_6, %c0_7] : memref<16x512xf32, #tpu.memory_space<vmem>>, vector<16x512xf32>
    tpu.vector_store %arg7[%c0_6, %c0_7], %7 {strides = array<i32>} : memref<16x512xf32, #tpu.memory_space<vmem>>, vector<16x512xf32>,
    %c0_i32_8 = arith.constant 0 : i32
    %9 = arith.cmpi eq, %arg2, %c0_i32_8 : i32
    %10 = arith.extui %9 : i1 to i32
    %c0_i32_9 = arith.constant 0 : i32
    %11 = arith.cmpi ne, %10, %c0_i32_9 : i32
    scf.if %11 {
      %c0_10 = arith.constant 0 : index
      %c0_11 = arith.constant 0 : index
      %12 = vector.load %arg7[%c0_10, %c0_11] : memref<16x512xf32, #tpu.memory_space<vmem>>, vector<16x512xf32>
      %c0_12 = arith.constant 0 : index
      %c0_13 = arith.constant 0 : index
      %13 = vector.load %arg5[%c0_12, %c0_13] : memref<16x1xf32, #tpu.memory_space<vmem>>, vector<16x1xf32>
      %14 = vector.broadcast %13 : vector<16x1xf32> to vector<16x512xf32>
      %15 = arith.addf %12, %14 : vector<16x512xf32>
      %cst_14 = arith.constant 0.000000e+00 : f32
      %16 = vector.broadcast %cst_14 : f32 to vector<16x512xf32>
      %17 = arith.maximumf %15, %16 : vector<16x512xf32>
      %18 = arith.truncf %17 : vector<16x512xf32> to vector<16x512xbf16>
      %c0_15 = arith.constant 0 : index
      %c0_16 = arith.constant 0 : index
      %19 = vector.load %arg6[%c0_15, %c0_16] : memref<16x512xbf16, #tpu.memory_space<vmem>>, vector<16x512xbf16>
      tpu.vector_store %arg6[%c0_15, %c0_16], %18 {strides = array<i32>} : memref<16x512xbf16, #tpu.memory_space<vmem>>, vector<16x512xbf16>,
    } else {
    }
    return
  }
  func.func @transform_0(%arg0: i32, %arg1: i32, %arg2: i32) -> (i32, i32) {
    %c0_i32 = arith.constant 0 : i32
    return %arg0, %arg2 : i32, i32
  }
  func.func @transform_1(%arg0: i32, %arg1: i32, %arg2: i32) -> (i32, i32) {
    %c0_i32 = arith.constant 0 : i32
    return %arg2, %arg1 : i32, i32
  }
  func.func @transform_2(%arg0: i32, %arg1: i32, %arg2: i32) -> (i32, i32) {
    %c0_i32 = arith.constant 0 : i32
    %c0_i32_0 = arith.constant 0 : i32
    return %arg0, %c0_i32 : i32, i32
  }
  func.func @transform_3(%arg0: i32, %arg1: i32, %arg2: i32) -> (i32, i32) {
    %c0_i32 = arith.constant 0 : i32
    return %arg0, %arg1 : i32, i32
  }
}

module attributes {stable_mosaic.version = 11 : i64} {
  func.func @_matmul_bias_act_kernel(%arg0: i32, %arg1: i32, %arg2: i32, %arg3: memref<16x128xbf16, #tpu.memory_space<vmem>>, %arg4: memref<128x512xbf16, #tpu.memory_space<vmem>>, %arg5: memref<16x1xf32, #tpu.memory_space<vmem>>, %arg6: memref<16x512xbf16, #tpu.memory_space<vmem>>, %arg7: memref<16x512xf32, #tpu.memory_space<vmem>>) attributes {dimension_semantics = [#tpu.dimension_semantics<parallel>, #tpu.dimension_semantics<parallel>, #tpu.dimension_semantics<arbitrary>], iteration_bounds = array<i64: 1, 2, 1>, scalar_prefetch = 0 : i64, scratch_operands = 1 : i64, tpu.core_type = #tpu.core_type<tc>, window_params = [{transform_indices = @transform_0, window_bounds = array<i64: 16, 128>}, {transform_indices = @transform_1, window_bounds = array<i64: 128, 512>}, {transform_indices = @transform_2, window_bounds = array<i64: 16, 1>}, {transform_indices = @transform_3, window_bounds = array<i64: 16, 512>}]} {
    %c0_i32 = arith.constant 0 : i32
    %0 = arith.cmpi eq, %arg2, %c0_i32 : i32
    %1 = arith.extui %0 : i1 to i32
    %c0_i32_0 = arith.constant 0 : i32
    %2 = arith.cmpi ne, %1, %c0_i32_0 : i32
    scf.if %2 {
      %cst_10 = arith.constant 0.000000e+00 : f32
      %12 = vector.broadcast %cst_10 : f32 to vector<16x512xf32>
      %c0_11 = arith.constant 0 : index
      %c0_12 = arith.constant 0 : index
      %13 = vector.load %arg7[%c0_11, %c0_12] : memref<16x512xf32, #tpu.memory_space<vmem>>, vector<16x512xf32>
      tpu.vector_store %arg7[%c0_11, %c0_12], %12 {strides = array<i32>} : memref<16x512xf32, #tpu.memory_space<vmem>>, vector<16x512xf32>,
    } else {
    }
    %c0 = arith.constant 0 : index
    %c0_1 = arith.constant 0 : index
    %3 = vector.load %arg7[%c0, %c0_1] : memref<16x512xf32, #tpu.memory_space<vmem>>, vector<16x512xf32>
    %c0_2 = arith.constant 0 : index
    %c0_3 = arith.constant 0 : index
    %4 = vector.load %arg3[%c0_2, %c0_3] : memref<16x128xbf16, #tpu.memory_space<vmem>>, vector<16x128xbf16>
    %c0_4 = arith.constant 0 : index
    %c0_5 = arith.constant 0 : index
    %5 = vector.load %arg4[%c0_4, %c0_5] : memref<128x512xbf16, #tpu.memory_space<vmem>>, vector<128x512xbf16>
    %cst = arith.constant dense<0.000000e+00> : vector<16x512xf32>
    %6 = tpu.matmul %4, %5, %cst {dimension_numbers = #tpu.dot_dimension_numbers<[1], [0], [0], [1], [0, 0, 1, 1], [], []>} : vector<16x128xbf16>, vector<128x512xbf16>, vector<16x512xf32> -> vector<16x512xf32>
    %7 = arith.addf %3, %6 : vector<16x512xf32>
    %c0_6 = arith.constant 0 : index
    %c0_7 = arith.constant 0 : index
    %8 = vector.load %arg7[%c0_6, %c0_7] : memref<16x512xf32, #tpu.memory_space<vmem>>, vector<16x512xf32>
    tpu.vector_store %arg7[%c0_6, %c0_7], %7 {strides = array<i32>} : memref<16x512xf32, #tpu.memory_space<vmem>>, vector<16x512xf32>,
    %c0_i32_8 = arith.constant 0 : i32
    %9 = arith.cmpi eq, %arg2, %c0_i32_8 : i32
    %10 = arith.extui %9 : i1 to i32
    %c0_i32_9 = arith.constant 0 : i32
    %11 = arith.cmpi ne, %10, %c0_i32_9 : i32
    scf.if %11 {
      %c0_10 = arith.constant 0 : index
      %c0_11 = arith.constant 0 : index
      %12 = vector.load %arg7[%c0_10, %c0_11] : memref<16x512xf32, #tpu.memory_space<vmem>>, vector<16x512xf32>
      %c0_12 = arith.constant 0 : index
      %c0_13 = arith.constant 0 : index
      %13 = vector.load %arg5[%c0_12, %c0_13] : memref<16x1xf32, #tpu.memory_space<vmem>>, vector<16x1xf32>
      %14 = vector.broadcast %13 : vector<16x1xf32> to vector<16x512xf32>
      %15 = arith.addf %12, %14 : vector<16x512xf32>
      %cst_14 = arith.constant 0.000000e+00 : f32
      %16 = vector.broadcast %cst_14 : f32 to vector<16x512xf32>
      %17 = arith.maximumf %15, %16 : vector<16x512xf32>
      %18 = arith.truncf %17 : vector<16x512xf32> to vector<16x512xbf16>
      %c0_15 = arith.constant 0 : index
      %c0_16 = arith.constant 0 : index
      %19 = vector.load %arg6[%c0_15, %c0_16] : memref<16x512xbf16, #tpu.memory_space<vmem>>, vector<16x512xbf16>
      tpu.vector_store %arg6[%c0_15, %c0_16], %18 {strides = array<i32>} : memref<16x512xbf16, #tpu.memory_space<vmem>>, vector<16x512xbf16>,
    } else {
    }
    return
  }
  func.func @transform_0(%arg0: i32, %arg1: i32, %arg2: i32) -> (i32, i32) {
    %c0_i32 = arith.constant 0 : i32
    return %arg0, %arg2 : i32, i32
  }
  func.func @transform_1(%arg0: i32, %arg1: i32, %arg2: i32) -> (i32, i32) {
    %c0_i32 = arith.constant 0 : i32
    return %arg2, %arg1 : i32, i32
  }
  func.func @transform_2(%arg0: i32, %arg1: i32, %arg2: i32) -> (i32, i32) {
    %c0_i32 = arith.constant 0 : i32
    %c0_i32_0 = arith.constant 0 : i32
    return %arg0, %c0_i32 : i32, i32
  }
  func.func @transform_3(%arg0: i32, %arg1: i32, %arg2: i32) -> (i32, i32) {
    %c0_i32 = arith.constant 0 : i32
    return %arg0, %arg1 : i32, i32
  }
}

module attributes {stable_mosaic.version = 11 : i64} {
  func.func @_matmul_bias_act_kernel(%arg0: i32, %arg1: i32, %arg2: i32, %arg3: memref<32x256xbf16, #tpu.memory_space<vmem>>, %arg4: memref<256x128xbf16, #tpu.memory_space<vmem>>, %arg5: memref<32x1xf32, #tpu.memory_space<vmem>>, %arg6: memref<32x128xbf16, #tpu.memory_space<vmem>>, %arg7: memref<32x128xf32, #tpu.memory_space<vmem>>) attributes {dimension_semantics = [#tpu.dimension_semantics<parallel>, #tpu.dimension_semantics<parallel>, #tpu.dimension_semantics<arbitrary>], iteration_bounds = array<i64: 1, 1, 1>, scalar_prefetch = 0 : i64, scratch_operands = 1 : i64, tpu.core_type = #tpu.core_type<tc>, window_params = [{transform_indices = @transform_0, window_bounds = array<i64: 32, 256>}, {transform_indices = @transform_1, window_bounds = array<i64: 256, 128>}, {transform_indices = @transform_2, window_bounds = array<i64: 32, 1>}, {transform_indices = @transform_3, window_bounds = array<i64: 32, 128>}]} {
    %c0_i32 = arith.constant 0 : i32
    %0 = arith.cmpi eq, %arg2, %c0_i32 : i32
    %1 = arith.extui %0 : i1 to i32
    %c0_i32_0 = arith.constant 0 : i32
    %2 = arith.cmpi ne, %1, %c0_i32_0 : i32
    scf.if %2 {
      %cst_10 = arith.constant 0.000000e+00 : f32
      %12 = vector.broadcast %cst_10 : f32 to vector<32x128xf32>
      %c0_11 = arith.constant 0 : index
      %c0_12 = arith.constant 0 : index
      %13 = vector.load %arg7[%c0_11, %c0_12] : memref<32x128xf32, #tpu.memory_space<vmem>>, vector<32x128xf32>
      tpu.vector_store %arg7[%c0_11, %c0_12], %12 {strides = array<i32>} : memref<32x128xf32, #tpu.memory_space<vmem>>, vector<32x128xf32>,
    } else {
    }
    %c0 = arith.constant 0 : index
    %c0_1 = arith.constant 0 : index
    %3 = vector.load %arg7[%c0, %c0_1] : memref<32x128xf32, #tpu.memory_space<vmem>>, vector<32x128xf32>
    %c0_2 = arith.constant 0 : index
    %c0_3 = arith.constant 0 : index
    %4 = vector.load %arg3[%c0_2, %c0_3] : memref<32x256xbf16, #tpu.memory_space<vmem>>, vector<32x256xbf16>
    %c0_4 = arith.constant 0 : index
    %c0_5 = arith.constant 0 : index
    %5 = vector.load %arg4[%c0_4, %c0_5] : memref<256x128xbf16, #tpu.memory_space<vmem>>, vector<256x128xbf16>
    %cst = arith.constant dense<0.000000e+00> : vector<32x128xf32>
    %6 = tpu.matmul %4, %5, %cst {dimension_numbers = #tpu.dot_dimension_numbers<[1], [0], [0], [1], [0, 0, 1, 1], [], []>} : vector<32x256xbf16>, vector<256x128xbf16>, vector<32x128xf32> -> vector<32x128xf32>
    %7 = arith.addf %3, %6 : vector<32x128xf32>
    %c0_6 = arith.constant 0 : index
    %c0_7 = arith.constant 0 : index
    %8 = vector.load %arg7[%c0_6, %c0_7] : memref<32x128xf32, #tpu.memory_space<vmem>>, vector<32x128xf32>
    tpu.vector_store %arg7[%c0_6, %c0_7], %7 {strides = array<i32>} : memref<32x128xf32, #tpu.memory_space<vmem>>, vector<32x128xf32>,
    %c0_i32_8 = arith.constant 0 : i32
    %9 = arith.cmpi eq, %arg2, %c0_i32_8 : i32
    %10 = arith.extui %9 : i1 to i32
    %c0_i32_9 = arith.constant 0 : i32
    %11 = arith.cmpi ne, %10, %c0_i32_9 : i32
    scf.if %11 {
      %c0_10 = arith.constant 0 : index
      %c0_11 = arith.constant 0 : index
      %12 = vector.load %arg7[%c0_10, %c0_11] : memref<32x128xf32, #tpu.memory_space<vmem>>, vector<32x128xf32>
      %c0_12 = arith.constant 0 : index
      %c0_13 = arith.constant 0 : index
      %13 = vector.load %arg5[%c0_12, %c0_13] : memref<32x1xf32, #tpu.memory_space<vmem>>, vector<32x1xf32>
      %14 = vector.broadcast %13 : vector<32x1xf32> to vector<32x128xf32>
      %15 = arith.addf %12, %14 : vector<32x128xf32>
      %cst_14 = arith.constant 0.000000e+00 : f32
      %16 = vector.broadcast %cst_14 : f32 to vector<32x128xf32>
      %17 = arith.maximumf %15, %16 : vector<32x128xf32>
      %18 = arith.truncf %17 : vector<32x128xf32> to vector<32x128xbf16>
      %c0_15 = arith.constant 0 : index
      %c0_16 = arith.constant 0 : index
      %19 = vector.load %arg6[%c0_15, %c0_16] : memref<32x128xbf16, #tpu.memory_space<vmem>>, vector<32x128xbf16>
      tpu.vector_store %arg6[%c0_15, %c0_16], %18 {strides = array<i32>} : memref<32x128xbf16, #tpu.memory_space<vmem>>, vector<32x128xbf16>,
    } else {
    }
    return
  }
  func.func @transform_0(%arg0: i32, %arg1: i32, %arg2: i32) -> (i32, i32) {
    %c0_i32 = arith.constant 0 : i32
    return %arg0, %arg2 : i32, i32
  }
  func.func @transform_1(%arg0: i32, %arg1: i32, %arg2: i32) -> (i32, i32) {
    %c0_i32 = arith.constant 0 : i32
    return %arg2, %arg1 : i32, i32
  }
  func.func @transform_2(%arg0: i32, %arg1: i32, %arg2: i32) -> (i32, i32) {
    %c0_i32 = arith.constant 0 : i32
    %c0_i32_0 = arith.constant 0 : i32
    return %arg0, %c0_i32 : i32, i32
  }
  func.func @transform_3(%arg0: i32, %arg1: i32, %arg2: i32) -> (i32, i32) {
    %c0_i32 = arith.constant 0 : i32
    return %arg0, %arg1 : i32, i32
  }
}

module attributes {stable_mosaic.version = 11 : i64} {
  func.func @_matmul_bias_act_kernel(%arg0: i32, %arg1: i32, %arg2: i32, %arg3: memref<16x512xbf16, #tpu.memory_space<vmem>>, %arg4: memref<512x128xbf16, #tpu.memory_space<vmem>>, %arg5: memref<1x128xf32, #tpu.memory_space<vmem>>, %arg6: memref<16x128xf32, #tpu.memory_space<vmem>>, %arg7: memref<16x128xf32, #tpu.memory_space<vmem>>) attributes {dimension_semantics = [#tpu.dimension_semantics<parallel>, #tpu.dimension_semantics<parallel>, #tpu.dimension_semantics<arbitrary>], iteration_bounds = array<i64: 1, 1, 3>, scalar_prefetch = 0 : i64, scratch_operands = 1 : i64, tpu.core_type = #tpu.core_type<tc>, window_params = [{transform_indices = @transform_0, window_bounds = array<i64: 16, 512>}, {transform_indices = @transform_1, window_bounds = array<i64: 512, 128>}, {transform_indices = @transform_2, window_bounds = array<i64: 1, 128>}, {transform_indices = @transform_3, window_bounds = array<i64: 16, 128>}]} {
    %c0_i32 = arith.constant 0 : i32
    %0 = arith.cmpi eq, %arg2, %c0_i32 : i32
    %1 = arith.extui %0 : i1 to i32
    %c0_i32_0 = arith.constant 0 : i32
    %2 = arith.cmpi ne, %1, %c0_i32_0 : i32
    scf.if %2 {
      %cst_9 = arith.constant 0.000000e+00 : f32
      %12 = vector.broadcast %cst_9 : f32 to vector<16x128xf32>
      %c0_10 = arith.constant 0 : index
      %c0_11 = arith.constant 0 : index
      %13 = vector.load %arg7[%c0_10, %c0_11] : memref<16x128xf32, #tpu.memory_space<vmem>>, vector<16x128xf32>
      tpu.vector_store %arg7[%c0_10, %c0_11], %12 {strides = array<i32>} : memref<16x128xf32, #tpu.memory_space<vmem>>, vector<16x128xf32>,
    } else {
    }
    %c0 = arith.constant 0 : index
    %c0_1 = arith.constant 0 : index
    %3 = vector.load %arg7[%c0, %c0_1] : memref<16x128xf32, #tpu.memory_space<vmem>>, vector<16x128xf32>
    %c0_2 = arith.constant 0 : index
    %c0_3 = arith.constant 0 : index
    %4 = vector.load %arg3[%c0_2, %c0_3] : memref<16x512xbf16, #tpu.memory_space<vmem>>, vector<16x512xbf16>
    %c0_4 = arith.constant 0 : index
    %c0_5 = arith.constant 0 : index
    %5 = vector.load %arg4[%c0_4, %c0_5] : memref<512x128xbf16, #tpu.memory_space<vmem>>, vector<512x128xbf16>
    %cst = arith.constant dense<0.000000e+00> : vector<16x128xf32>
    %6 = tpu.matmul %4, %5, %cst {dimension_numbers = #tpu.dot_dimension_numbers<[1], [0], [0], [1], [0, 0, 1, 1], [], []>} : vector<16x512xbf16>, vector<512x128xbf16>, vector<16x128xf32> -> vector<16x128xf32>
    %7 = arith.addf %3, %6 : vector<16x128xf32>
    %c0_6 = arith.constant 0 : index
    %c0_7 = arith.constant 0 : index
    %8 = vector.load %arg7[%c0_6, %c0_7] : memref<16x128xf32, #tpu.memory_space<vmem>>, vector<16x128xf32>
    tpu.vector_store %arg7[%c0_6, %c0_7], %7 {strides = array<i32>} : memref<16x128xf32, #tpu.memory_space<vmem>>, vector<16x128xf32>,
    %c2_i32 = arith.constant 2 : i32
    %9 = arith.cmpi eq, %arg2, %c2_i32 : i32
    %10 = arith.extui %9 : i1 to i32
    %c0_i32_8 = arith.constant 0 : i32
    %11 = arith.cmpi ne, %10, %c0_i32_8 : i32
    scf.if %11 {
      %c0_9 = arith.constant 0 : index
      %c0_10 = arith.constant 0 : index
      %12 = vector.load %arg7[%c0_9, %c0_10] : memref<16x128xf32, #tpu.memory_space<vmem>>, vector<16x128xf32>
      %c0_11 = arith.constant 0 : index
      %c0_12 = arith.constant 0 : index
      %13 = vector.load %arg5[%c0_11, %c0_12] : memref<1x128xf32, #tpu.memory_space<vmem>>, vector<1x128xf32>
      %14 = vector.broadcast %13 : vector<1x128xf32> to vector<16x128xf32>
      %15 = arith.addf %12, %14 : vector<16x128xf32>
      %16 = arith.negf %15 : vector<16x128xf32>
      %17 = math.exp %16 : vector<16x128xf32>
      %cst_13 = arith.constant 1.000000e+00 : f32
      %18 = vector.broadcast %cst_13 : f32 to vector<16x128xf32>
      %19 = arith.addf %18, %17 : vector<16x128xf32>
      %20 = arith.divf %18, %19 : vector<16x128xf32>
      %c0_14 = arith.constant 0 : index
      %c0_15 = arith.constant 0 : index
      %21 = vector.load %arg6[%c0_14, %c0_15] : memref<16x128xf32, #tpu.memory_space<vmem>>, vector<16x128xf32>
      tpu.vector_store %arg6[%c0_14, %c0_15], %20 {strides = array<i32>} : memref<16x128xf32, #tpu.memory_space<vmem>>, vector<16x128xf32>,
    } else {
    }
    return
  }
  func.func @transform_0(%arg0: i32, %arg1: i32, %arg2: i32) -> (i32, i32) {
    %c0_i32 = arith.constant 0 : i32
    return %arg0, %arg2 : i32, i32
  }
  func.func @transform_1(%arg0: i32, %arg1: i32, %arg2: i32) -> (i32, i32) {
    %c0_i32 = arith.constant 0 : i32
    return %arg2, %arg1 : i32, i32
  }
  func.func @transform_2(%arg0: i32, %arg1: i32, %arg2: i32) -> (i32, i32) {
    %c0_i32 = arith.constant 0 : i32
    %c0_i32_0 = arith.constant 0 : i32
    return %c0_i32, %arg1 : i32, i32
  }
  func.func @transform_3(%arg0: i32, %arg1: i32, %arg2: i32) -> (i32, i32) {
    %c0_i32 = arith.constant 0 : i32
    return %arg0, %arg1 : i32, i32
  }
}

</mosaic_0001>

<bundles_post_ra>
// kernel: forward.5
= control target key start
LH: loop header
LB: loop body
LE: loop exit
PB: predicated region body
PF: predicated region fallthrough
CT: control target
= control target key end

     0   :  { %8 = vsyncpa [#allocation3], 0  ;;  %s1300_s0 = inlined_call_operand.vmem [shape: f32[2,3040], index: 0, kind: input, shape index: {}]   ;;  %s1301_s1 = inlined_call_operand.hbm [shape: f32[1,3040], index: 1, kind: input, shape index: {}]   ;;  %s1302_s2 = inlined_call_operand.hbm [shape: f32[1,3040], index: 2, kind: input, shape index: {}]   ;;  %s1303_s3 = inlined_call_operand.vmem [shape: f32[2,3040], index: 3, kind: output, shape index: {}]  }
   0x1   :  { %9 = vsyncpa [#allocation5], 0  ;;  %s955_s12 = smov [#allocation2]   ;;  %s956_s14 = smov [#allocation4]  }
   0x2   :  { %s18_s13 = sshll.u32 %s955_s12, 4  ;;  %s28_s15 = sshll.u32 %s956_s14, 4  ;;  %s19_s13 = int_to_ptr.vmem [resolvable:$true] %s18_s13  ;;  %s29_s15 = int_to_ptr.vmem [resolvable:$true] %s28_s15 }
   0x3   :  { %s919_s16 = scalar_lea.vmem %s19_s13, 384  ;;  %p924_p1 = scmp.lt.s32.totalorder %s19_s13, %s19_s13 }
   0x4   :  { %p920_p0 = scmp.ne.s32.totalorder %s19_s13, %s919_s16  ;;  %p925_p2 = scmp.lt.s32.totalorder %s919_s16, %s919_s16 }
   0x6   :  { %p926_p3 = por %p925_p2, %p924_p1 }
   0x8   :  { %p927_p4 = pnand %p926_p3, %p920_p0 }
   0xa   :  { %930 = shalt.err (!%p927_p4)
}
   0xb   :  { %21 = dma.hbm_to_vmem [thread:$0]  %s1301_s1, 384, %s19_s13, [#allocation3]  }
   0xc   :  { %s939_s19 = scalar_lea.vmem %s29_s15, 384  ;;  %p944_p6 = scmp.lt.s32.totalorder %s29_s15, %s29_s15 }
   0xd   :  { %p940_p5 = scmp.ne.s32.totalorder %s29_s15, %s939_s19  ;;  %p945_p7 = scmp.lt.s32.totalorder %s939_s19, %s939_s19 }
   0xf   :  { %p946_p8 = por %p945_p7, %p944_p6 }
  0x11   :  { %p947_p9 = pnand %p946_p8, %p940_p5 }
  0x13   :  { %950 = shalt.err (!%p947_p9)
}
  0x14   :  { %31 = dma.hbm_to_vmem [thread:$0]  %s1302_s2, 384, %s29_s15, [#allocation5]  }
  0x15   :  { %951 = dma.done.wait [#allocation3], 384  }
  0x16   :  { %952 = vsyncadd [#allocation3], 4294966912 }
  0x17   :  { %953 = dma.done.wait [#allocation5], 384  }
  0x18   :  { %954 = vsyncadd [#allocation5], 4294966912  ;;  %v54_v0 = vlaneseq  ;;  %v957_v1 = vmov 1983009808   ;;  %v993_v6 = vld [vmem:[%s1300_s0] sm:$0xff]  ;;  %v1002_v9 = vld [vmem:[%s1300_s0 + $0x8] sm:$0xff] }
  0x19   :  { %v52_v2 = vunpack.c.l.s4 %v957_v1  ;;  %v50_v7 = vcombine.high %v993_v6, %v993_v6  ;;  %vm176_vm0 = vcmask 1041408   ;;  %v67_v13 = vcombine.high %v1002_v9, %v1002_v9  ;;  %v1017_v22 = vld [vmem:[%s1300_s0 + $0x10] sm:$0xff]  ;;  %v1031_v36 = vld [vmem:[%s1300_s0 + $0x18] sm:$0xff]  ;;  %v1045_v50 = vld [vmem:[%s1300_s0 + $0x20] sm:$0xff] }
  0x1a   :  { %v985_v3 = vshrl.u32 %v54_v0, 7  ;;  %v84_v27 = vcombine.high %v1017_v22, %v1017_v22  ;;  %v101_v41 = vcombine.high %v1031_v36, %v1031_v36  ;;  %v118_v55 = vcombine.high %v1045_v50, %v1045_v50  ;;  %v1059_v0 = vld [vmem:[%s1300_s0 + $0x28] sm:$0xff] }
  0x1b   :  { %v53_v4 = vunpack.c.0.s8 %v52_v2  ;;  %vm222_vm1 = vcmask 779264   ;;  %vm886_vm2 = vcmask 1043458   ;;  %vm888_vm4 = vcmask 1045508  }
  0x1c   :  { %vm887_vm3 = vmor %vm886_vm2, %vm176_vm0  ;;  %vm890_vm5 = vcmask 785414  }
  0x1d   :  { %v988_v5 = vsub.s32 %v53_v4, %v985_v3  ;;  %vm889_vm6 = vmor %vm888_vm4, %vm887_vm3 }
  0x1e   :  { %vm891_vm7 = vmor %vm890_vm5, %vm889_vm6 }
  0x1f   :  { %v57_v8 = vrot.slane %v993_v6, %v988_v5  ;;  %v64_v10 = vrot.slane %v50_v7, %v988_v5  ;;  %v74_v14 = vrot.slane %v1002_v9, %v988_v5  ;;  %v81_v19 = vrot.slane %v67_v13, %v988_v5 }
  0x20   :  { %v91_v28 = vrot.slane %v1017_v22, %v988_v5  ;;  %v98_v33 = vrot.slane %v84_v27, %v988_v5  ;;  %v108_v42 = vrot.slane %v1031_v36, %v988_v5  ;;  %v115_v47 = vrot.slane %v101_v41, %v988_v5 }
  0x21   :  { %v65_v11 = vcombine.high %v57_v8, %v57_v8  ;;  %v66_v12 = vcombine.high %v64_v10, %v64_v10  ;;  %v177_v15 = vsel %vm176_vm0, %v57_v8, 0.0  ;;  %v180_v18 = vsel %vm176_vm0, %v64_v10, 0.0 }
  0x22   :  { %v82_v20 = vcombine.high %v74_v14, %v74_v14  ;;  %v184_v24 = vsel %vm176_vm0, %v74_v14, 0.0  ;;  %v83_v26 = vcombine.high %v81_v19, %v81_v19  ;;  %v188_v31 = vsel %vm176_vm0, %v81_v19, 0.0 }
  0x23   :  { %v178_v16 = vsel %vm176_vm0, %v65_v11, 0.0  ;;  %v182_v21 = vsel %vm176_vm0, %v66_v12, 0.0  ;;  %v99_v34 = vcombine.high %v91_v28, %v91_v28  ;;  %v192_v38 = vsel %vm176_vm0, %v91_v28, 0.0 }
  0x24   :  { %v179_v17 = vadd.f32 %v178_v16, %v177_v15  ;;  %v186_v29 = vsel %vm176_vm0, %v82_v20, 0.0  ;;  %v190_v35 = vsel %vm176_vm0, %v83_v26, 0.0  ;;  %v100_v40 = vcombine.high %v98_v33, %v98_v33 }
  0x25   :  { %v194_v43 = vsel %vm176_vm0, %v99_v34, 0.0  ;;  %v196_v45 = vsel %vm176_vm0, %v98_v33, 0.0  ;;  %v116_v48 = vcombine.high %v108_v42, %v108_v42  ;;  %v200_v52 = vsel %vm176_vm0, %v108_v42, 0.0 }
  0x26   :  { %v181_v23 = vadd.f32 %v180_v18, %v179_v17  ;;  %v198_v49 = vsel %vm176_vm0, %v100_v40, 0.0  ;;  %v117_v54 = vcombine.high %v115_v47, %v115_v47  ;;  %v125_v56 = vrot.slane %v1045_v50, %v988_v5 }
  0x27   :  { %v202_v57 = vsel %vm176_vm0, %v116_v48, 0.0  ;;  %v204_v59 = vsel %vm176_vm0, %v115_v47, 0.0  ;;  %v132_v61 = vrot.slane %v118_v55, %v988_v5  ;;  %v135_v8 = vcombine.high %v1059_v0, %v1059_v0 }
  0x28   :  { %v183_v25 = vadd.f32 %v182_v21, %v181_v23  ;;  %v133_v62 = vcombine.high %v125_v56, %v125_v56  ;;  %v206_v63 = vsel %vm176_vm0, %v117_v54, 0.0  ;;  %v208_v2 = vsel %vm176_vm0, %v125_v56, 0.0 }
  0x29   :  { %v134_v7 = vcombine.high %v132_v61, %v132_v61  ;;  %v142_v10 = vrot.slane %v1059_v0, %v988_v5  ;;  %v212_v13 = vsel %vm176_vm0, %v132_v61, 0.0  ;;  %v149_v15 = vrot.slane %v135_v8, %v988_v5 }
  0x2a   :  { %v185_v30 = vadd.f32 %v184_v24, %v183_v25  ;;  %v210_v11 = vsel %vm176_vm0, %v133_v62, 0.0 }
  0x2b   :  { %v150_v16 = vcombine.high %v142_v10, %v142_v10  ;;  %v214_v17 = vsel %vm176_vm0, %v134_v7, 0.0  ;;  %v216_v19 = vsel %vm176_vm0, %v142_v10, 0.0  ;;  %v151_v21 = vcombine.high %v149_v15, %v149_v15 }
  0x2c   :  { %v187_v32 = vadd.f32 %v186_v29, %v185_v30  ;;  %v220_v25 = vsel %vm176_vm0, %v149_v15, 0.0  ;;  %v958_v30 = vmov 269488144  }
  0x2d   :  { %v218_v23 = vsel %vm176_vm0, %v150_v16, 0.0  ;;  %v223_v27 = vsel %vm222_vm1, %v151_v21, 0.0 }
  0x2e   :  { %v189_v37 = vadd.f32 %v188_v31, %v187_v32  ;;  %v231_v31 = vunpack.c.l.s4 %v958_v30 }
  0x30   :  { %v191_v39 = vadd.f32 %v190_v35, %v189_v37  ;;  %v232_v32 = vunpack.c.0.s8 %v231_v31 }
  0x32   :  { %v193_v44 = vadd.f32 %v192_v38, %v191_v39  ;;  %v1075_v33 = vsub.s32 %v232_v32, %v985_v3 }
  0x34   :  { %v195_v46 = vadd.f32 %v194_v43, %v193_v44 }
  0x36   :  { %v197_v51 = vadd.f32 %v196_v45, %v195_v46 }
  0x38   :  { %v199_v53 = vadd.f32 %v198_v49, %v197_v51 }
  0x3a   :  { %v201_v58 = vadd.f32 %v200_v52, %v199_v53 }
  0x3c   :  { %v203_v60 = vadd.f32 %v202_v57, %v201_v58 }
  0x3e   :  { %v205_v1 = vadd.f32 %v204_v59, %v203_v60 }
  0x40   :  { %v207_v4 = vadd.f32 %v206_v63, %v205_v1 }
  0x42   :  { %v209_v12 = vadd.f32 %v208_v2, %v207_v4 }
  0x44   :  { %v211_v14 = vadd.f32 %v210_v11, %v209_v12 }
  0x46   :  { %v213_v18 = vadd.f32 %v212_v13, %v211_v14 }
  0x48   :  { %v215_v20 = vadd.f32 %v214_v17, %v213_v18 }
  0x4a   :  { %v217_v24 = vadd.f32 %v216_v19, %v215_v20 }
  0x4c   :  { %v219_v26 = vadd.f32 %v218_v23, %v217_v24 }
  0x4e   :  { %v221_v28 = vadd.f32 %v220_v25, %v219_v26 }
  0x50   :  { %v224_v29 = vadd.f32 %v223_v27, %v221_v28 }
  0x52   :  { %225 = vadd.xlane.f32.xlu0 %v224_v29 }
  0xdb   :  { %v226_v34 = vpop.xlane.xlu0 %225 }
  0xdc   :  { %v228_v35 = vmul.f32 0.00032894738, %v226_v34 }
  0xde   :  { %v236_v37 = vrot.slane %v228_v35, %v1075_v33 }
  0xe0   :  { %v1079_v38 = vsub.f32 %v993_v6, %v236_v37  ;;  %v1082_v39 = vsub.f32 %v1002_v9, %v236_v37  ;;  %v1091_v46 = vsub.f32 %v1017_v22, %v236_v37  ;;  %v1103_v59 = vsub.f32 %v1031_v36, %v236_v37 }
  0xe1   :  { %v1114_v14 = vsub.f32 %v1045_v50, %v236_v37  ;;  %v1125_v29 = vsub.f32 %v1059_v0, %v236_v37 }
  0xe2   :  { %v244_v40 = vmul.f32 %v1079_v38, %v1079_v38  ;;  %v245_v43 = vmul.f32 %v1082_v39, %v1082_v39  ;;  %v246_v54 = vmul.f32 %v1091_v46, %v1091_v46  ;;  %v247_v8 = vmul.f32 %v1103_v59, %v1103_v59 }
  0xe3   :  { %v248_v24 = vmul.f32 %v1114_v14, %v1114_v14 }
  0xe4   :  { %v256_v41 = vcombine.high %v244_v40, %v244_v40  ;;  %v263_v42 = vrot.slane %v244_v40, %v988_v5  ;;  %v273_v6 = vcombine.high %v245_v43, %v245_v43  ;;  %v280_v9 = vrot.slane %v245_v43, %v988_v5 }
  0xe5   :  { %v290_v62 = vcombine.high %v246_v54, %v246_v54  ;;  %v297_v63 = vrot.slane %v246_v54, %v988_v5  ;;  %v307_v17 = vcombine.high %v247_v8, %v247_v8  ;;  %v314_v18 = vrot.slane %v247_v8, %v988_v5 }
  0xe6   :  { %v270_v44 = vrot.slane %v256_v41, %v988_v5  ;;  %v271_v45 = vcombine.high %v263_v42, %v263_v42  ;;  %v382_v48 = vsel %vm176_vm0, %v263_v42, 0.0  ;;  %v287_v55 = vrot.slane %v273_v6, %v988_v5 }
  0xe7   :  { %v288_v56 = vcombine.high %v280_v9, %v280_v9  ;;  %v389_v58 = vsel %vm176_vm0, %v280_v9, 0.0  ;;  %v304_v10 = vrot.slane %v290_v62, %v988_v5  ;;  %v305_v11 = vcombine.high %v297_v63, %v297_v63 }
  0xe8   :  { %v272_v47 = vcombine.high %v270_v44, %v270_v44  ;;  %v383_v49 = vsel %vm176_vm0, %v271_v45, 0.0  ;;  %v385_v52 = vsel %vm176_vm0, %v270_v44, 0.0  ;;  %v289_v61 = vcombine.high %v287_v55, %v287_v55 }
  0xe9   :  { %v384_v51 = vadd.f32 %v383_v49, %v382_v48  ;;  %v391_v1 = vsel %vm176_vm0, %v288_v56, 0.0  ;;  %v393_v4 = vsel %vm176_vm0, %v287_v55, 0.0  ;;  %v397_v13 = vsel %vm176_vm0, %v297_v63, 0.0 }
  0xea   :  { %v387_v22 = vsel %vm176_vm0, %v272_v47, 0.0  ;;  %v395_v36 = vsel %vm176_vm0, %v289_v61, 0.0  ;;  %v306_v16 = vcombine.high %v304_v10, %v304_v10  ;;  %v399_v19 = vsel %vm176_vm0, %v305_v11, 0.0 }
  0xeb   :  { %v386_v53 = vadd.f32 %v385_v52, %v384_v51  ;;  %v401_v21 = vsel %vm176_vm0, %v304_v10, 0.0  ;;  %v321_v25 = vrot.slane %v307_v17, %v988_v5  ;;  %v322_v26 = vcombine.high %v314_v18, %v314_v18 }
  0xec   :  { %v403_v50 = vsel %vm176_vm0, %v306_v16, 0.0  ;;  %v405_v28 = vsel %vm176_vm0, %v314_v18, 0.0  ;;  %v324_v32 = vcombine.high %v248_v24, %v248_v24  ;;  %v331_v34 = vrot.slane %v248_v24, %v988_v5  ;;  %v450_v18 = vld [vmem:[#allocation2 + $0x8] sm:$0xff] }
  0xed   :  { %v388_v57 = vadd.f32 %v387_v22, %v386_v53  ;;  %v323_v31 = vcombine.high %v321_v25, %v321_v25  ;;  %v407_v35 = vsel %vm176_vm0, %v322_v26, 0.0  ;;  %v409_v41 = vsel %vm176_vm0, %v321_v25, 0.0 }
  0xee   :  { %v249_v43 = vmul.f32 %v1125_v29, %v1125_v29  ;;  %v338_v44 = vrot.slane %v324_v32, %v988_v5  ;;  %v339_v45 = vcombine.high %v331_v34, %v331_v34  ;;  %v413_v6 = vsel %vm176_vm0, %v331_v34, 0.0 }
  0xef   :  { %v390_v60 = vadd.f32 %v389_v58, %v388_v57  ;;  %v411_v0 = vsel %vm176_vm0, %v323_v31, 0.0  ;;  %v1145_v8 = vsub.s32 0, %v985_v3  ;;  %v1148_v10 = vsub.s32 1, %v985_v3  ;;  %v451_v31 = vld [vmem:[#allocation2 + $0x10] sm:$0xff] }
  0xf0   :  { %v340_v9 = vcombine.high %v338_v44, %v338_v44  ;;  %v341_v48 = vcombine.high %v249_v43, %v249_v43  ;;  %v348_v49 = vrot.slane %v249_v43, %v988_v5  ;;  %v415_v51 = vsel %vm176_vm0, %v339_v45, 0.0 }
  0xf1   :  { %v392_v2 = vadd.f32 %v391_v1, %v390_v60  ;;  %v417_v53 = vsel %vm176_vm0, %v338_v44, 0.0  ;;  %v1151_v11 = vsub.s32 2, %v985_v3  ;;  %v1163_v16 = vsub.s32 6, %v985_v3 }
  0xf2   :  { %v355_v55 = vrot.slane %v341_v48, %v988_v5  ;;  %v356_v56 = vcombine.high %v348_v49, %v348_v49  ;;  %v419_v22 = vsel %vm176_vm0, %v340_v9, 0.0  ;;  %v421_v58 = vsel %vm176_vm0, %v348_v49, 0.0 }
  0xf3   :  { %v394_v7 = vadd.f32 %v393_v4, %v392_v2  ;;  %v1166_v17 = vsub.s32 7, %v985_v3  ;;  %v522_v43 = vrot.slane %v451_v31, %v1145_v8  ;;  %v526_v48 = vrot.slane %v451_v31, %v1148_v10 }
  0xf4   :  { %v357_v61 = vcombine.high %v355_v55, %v355_v55  ;;  %v423_v62 = vsel %vm176_vm0, %v356_v56, 0.0  ;;  %v425_v1 = vsel %vm176_vm0, %v355_v55, 0.0  ;;  %v530_v49 = vrot.slane %v451_v31, %v1151_v11 }
  0xf5   :  { %v396_v12 = vadd.f32 %v395_v36, %v394_v7  ;;  %v1154_v36 = vsub.s32 3, %v985_v3  ;;  %v546_v56 = vrot.slane %v451_v31, %v1163_v16 }
  0xf6   :  { %v427_v4 = vsel %vm222_vm1, %v357_v61, 0.0  ;;  %v665_v61 = vld [vmem:[#allocation4] sm:$0xff] }
  0xf7   :  { %v398_v15 = vadd.f32 %v397_v13, %v396_v12  ;;  %v449_v12 = vld [vmem:[#allocation2] sm:$0xff]  ;;  %v1157_v13 = vsub.s32 4, %v985_v3 }
  0xf8   :  { %v482_v26 = vrot.slane %v449_v12, %v1163_v16 }
  0xf9   :  { %v400_v20 = vadd.f32 %v399_v19, %v398_v15  ;;  %v1160_v15 = vsub.s32 5, %v985_v3  ;;  %v458_v19 = vrot.slane %v449_v12, %v1145_v8  ;;  %v474_v24 = vrot.slane %v449_v12, %v1157_v13 }
  0xfa   :  { %v490_v3 = vrot.slane %v450_v18, %v1145_v8  ;;  %v506_v32 = vrot.slane %v450_v18, %v1157_v13 }
  0xfb   :  { %v402_v23 = vadd.f32 %v401_v21, %v400_v20  ;;  %v462_v20 = vrot.slane %v449_v12, %v1148_v10  ;;  %v466_v21 = vrot.slane %v449_v12, %v1151_v11  ;;  %v478_v25 = vrot.slane %v449_v12, %v1160_v15 }
  0xfc   :  { %v510_v34 = vrot.slane %v450_v18, %v1160_v15  ;;  %v542_v55 = vrot.slane %v451_v31, %v1160_v15 }
  0xfd   :  { %v404_v27 = vadd.f32 %v403_v50, %v402_v23  ;;  %v470_v23 = vrot.slane %v449_v12, %v1154_v36  ;;  %v486_v50 = vrot.slane %v449_v12, %v1166_v17  ;;  %v1185_v44 = vcombine.low %v474_v24, %v478_v25  ;;  %v667_v25 = vld [vmem:[#allocation4 + $0x10] sm:$0xff] }
  0xfe   :  { %v1195_v9 = vcombine.low %v506_v32, %v510_v34  ;;  %v619_v12 = vcombine.low %v522_v43, %v526_v48  ;;  %v678_v24 = vrot.slane %v665_v61, %v1148_v10  ;;  %v754_v48 = vrot.slane %v667_v25, %v1157_v13 }
  0xff   :  { %v406_v30 = vadd.f32 %v405_v28, %v404_v27  ;;  %v494_v27 = vrot.slane %v450_v18, %v1148_v10  ;;  %v498_v28 = vrot.slane %v450_v18, %v1151_v11  ;;  %v1187_v45 = vcombine.low %v482_v26, %v486_v50 }
 0x100   :  { %v682_v26 = vrot.slane %v665_v61, %v1151_v11  ;;  %v686_v50 = vrot.slane %v665_v61, %v1154_v36 }
 0x101   :  { %v408_v40 = vadd.f32 %v407_v35, %v406_v30  ;;  %v502_v30 = vrot.slane %v450_v18, %v1154_v36  ;;  %v551_v35 = vcombine.low %v458_v19, %v462_v20  ;;  %v666_v19 = vld [vmem:[#allocation4 + $0x8] sm:$0xff] }
 0x102   :  { %v710_v32 = vrot.slane %v666_v19, %v1148_v10  ;;  %v714_v34 = vrot.slane %v666_v19, %v1151_v11  ;;  %v734_v43 = vrot.slane %v666_v19, %v1166_v17 }
 0x103   :  { %v410_v42 = vadd.f32 %v409_v41, %v408_v40  ;;  %v552_v40 = vcombine.low %v466_v21, %v470_v23  ;;  %v514_v41 = vrot.slane %v450_v18, %v1163_v16  ;;  %v674_v23 = vrot.slane %v665_v61, %v1145_v8 }
 0x105   :  { %v412_v37 = vadd.f32 %v411_v0, %v410_v42  ;;  %v518_v42 = vrot.slane %v450_v18, %v1166_v17  ;;  %v1189_v0 = vcombine.low %v490_v3, %v494_v27  ;;  %v690_v3 = vrot.slane %v665_v61, %v1157_v13 }
 0x106   :  { %v694_v27 = vrot.slane %v665_v61, %v1160_v15 }
 0x107   :  { %v414_v47 = vadd.f32 %v413_v6, %v412_v37  ;;  %v559_v37 = vrot.slane %v551_v35, %v988_v5  ;;  %v566_v6 = vrot.slane %v552_v40, %v988_v5  ;;  %v718_v35 = vrot.slane %v666_v19, %v1154_v36 }
 0x108   :  { %v722_v40 = vrot.slane %v666_v19, %v1157_v13 }
 0x109   :  { %v416_v52 = vadd.f32 %v415_v51, %v414_v47  ;;  %v1193_v47 = vcombine.low %v498_v28, %v502_v30  ;;  %v534_v51 = vrot.slane %v451_v31, %v1154_v36  ;;  %v698_v28 = vrot.slane %v665_v61, %v1163_v16 }
 0x10a   :  { %v702_v30 = vrot.slane %v665_v61, %v1166_v17 }
 0x10b   :  { %v418_v54 = vadd.f32 %v417_v53, %v416_v52  ;;  %v1200_v52 = vcombine.low %v514_v41, %v518_v42  ;;  %v620_v18 = vcombine.low %v530_v49, %v534_v51  ;;  %v726_v41 = vrot.slane %v666_v19, %v1160_v15 }
 0x10c   :  { %v730_v42 = vrot.slane %v666_v19, %v1163_v16  ;;  %v758_v49 = vrot.slane %v667_v25, %v1160_v15  ;;  %v762_v51 = vrot.slane %v667_v25, %v1163_v16 }
 0x10d   :  { %v420_v57 = vadd.f32 %v419_v22, %v418_v54  ;;  %v538_v54 = vrot.slane %v451_v31, %v1157_v13  ;;  %v550_v22 = vrot.slane %v451_v31, %v1166_v17  ;;  %v706_v31 = vrot.slane %v666_v19, %v1145_v8 }
 0x10e   :  { %v852_v61 = vcombine.low %v754_v48, %v758_v49 }
 0x10f   :  { %v422_v60 = vadd.f32 %v421_v58, %v420_v57  ;;  %v576_v58 = vrot.slane %v1185_v44, %v988_v5  ;;  %v1220_v20 = vcombine.low %v538_v54, %v542_v55  ;;  %v1222_v21 = vcombine.low %v546_v56, %v550_v22 }
 0x110   :  { %v784_v54 = vcombine.low %v690_v3, %v694_v27  ;;  %v785_v55 = vcombine.low %v698_v28, %v702_v30  ;;  %v801_v56 = vcombine.low %v706_v31, %v710_v32  ;;  %v818_v22 = vcombine.low %v722_v40, %v726_v41 }
 0x111   :  { %v424_v63 = vadd.f32 %v423_v62, %v422_v60  ;;  %v583_v60 = vrot.slane %v1187_v45, %v988_v5  ;;  %v1210_v62 = vcombine.low %v559_v37, %v566_v6  ;;  %v742_v37 = vrot.slane %v667_v25, %v1148_v10 }
 0x112   :  { %v746_v6 = vrot.slane %v667_v25, %v1151_v11  ;;  %v802_v10 = vcombine.low %v714_v34, %v718_v35  ;;  %v819_v11 = vcombine.low %v730_v42, %v734_v43  ;;  %v644_v13 = vrot.slane %v1220_v20, %v988_v5 }
 0x113   :  { %v426_v2 = vadd.f32 %v425_v1, %v424_v63  ;;  %v593_v63 = vrot.slane %v1189_v0, %v988_v5  ;;  %v600_v1 = vrot.slane %v1193_v47, %v988_v5  ;;  %v738_v0 = vrot.slane %v667_v25, %v1145_v8 }
 0x114   :  { %v750_v47 = vrot.slane %v667_v25, %v1154_v36  ;;  %v627_v8 = vrot.slane %v619_v12, %v988_v5  ;;  %v634_v36 = vrot.slane %v620_v18, %v988_v5  ;;  %v651_v15 = vrot.slane %v1222_v21, %v988_v5 }
 0x115   :  { %v428_v7 = vadd.f32 %v427_v4, %v426_v2  ;;  %v610_v2 = vrot.slane %v1195_v9, %v988_v5  ;;  %v767_v9 = vcombine.low %v674_v23, %v678_v24  ;;  %v792_v12 = vrot.slane %v784_v54, %v988_v5 }
 0x116   :  { %v799_v23 = vrot.slane %v785_v55, %v988_v5  ;;  %v809_v18 = vrot.slane %v801_v56, %v988_v5  ;;  %v816_v24 = vrot.slane %v802_v10, %v988_v5  ;;  %v826_v20 = vrot.slane %v818_v22, %v988_v5 }
 0x117   :  { %429 = vadd.xlane.f32.xlu0 %v428_v7  ;;  %v617_v7 = vrot.slane %v1200_v52, %v988_v5  ;;  %v766_v52 = vrot.slane %v667_v25, %v1166_v17  ;;  %v775_v16 = vrot.slane %v767_v9, %v988_v5  ;;  %v835_v17 = vcombine.low %v738_v0, %v742_v37 }
 0x118   :  { %v833_v21 = vrot.slane %v819_v11, %v988_v5  ;;  %v584_v25 = vcombine.low %v576_v58, %v583_v60  ;;  %v635_v3 = vcombine.low %v627_v8, %v634_v36  ;;  %v860_v31 = vrot.slane %v852_v61, %v988_v5 }
 0x119   :  { %v843_v28 = vrot.slane %v835_v17, %v988_v5  ;;  %v652_v35 = vcombine.low %v644_v13, %v651_v15  ;;  %v800_v44 = vcombine.low %v792_v12, %v799_v23  ;;  %v817_v58 = vcombine.low %v809_v18, %v816_v24 }
 0x11a   :  { %v834_v60 = vcombine.low %v826_v20, %v833_v21 }
 0x1a0   :  { %v430_v53 = vpop.xlane.xlu0 %429 }
 0x1a1   :  { %v431_v57 = vmul.f32 0.00032894738, %v430_v53  ;;  %v768_v53 = vcombine.low %v682_v26, %v686_v50  ;;  %v601_v26 = vcombine.low %v593_v63, %v600_v1  ;;  %v618_v50 = vcombine.low %v610_v2, %v617_v7 }
 0x1a3   :  { %v432_v4 = vadd.f32 1e-05, %v431_v57  ;;  %v836_v57 = vcombine.low %v746_v6, %v750_v47  ;;  %v782_v19 = vrot.slane %v768_v53, %v988_v5 }
 0x1a5   :  { %909 = vrsqrt.f32 %v432_v4  ;;  %v853_v4 = vcombine.low %v762_v51, %v766_v52  ;;  %v850_v30 = vrot.slane %v836_v57, %v988_v5  ;;  %v783_v45 = vcombine.low %v775_v16, %v782_v19 }
 0x1a7   :  { %v867_v32 = vrot.slane %v853_v4, %v988_v5  ;;  %v851_v40 = vcombine.low %v843_v28, %v850_v30 }
 0x1a9   :  { %v868_v41 = vcombine.low %v860_v31, %v867_v32 }
 0x1b2   :  { %v910_v27 = vpop.eup %909 }
 0x1b3   :  { %v441_v34 = vrot.slane %v910_v27, %v1075_v33 }
 0x1b5   :  { %v443_v63 = vmul.f32 %v441_v34, %v1079_v38  ;;  %v444_v1 = vmul.f32 %v441_v34, %v1082_v39  ;;  %v445_v2 = vmul.f32 %v441_v34, %v1091_v46  ;;  %v446_v7 = vmul.f32 %v441_v34, %v1103_v59 }
 0x1b6   :  { %v447_v5 = vmul.f32 %v441_v34, %v1114_v14  ;;  %v448_v33 = vmul.f32 %v441_v34, %v1125_v29 }
 0x1b7   :  { %v659_v42 = vmul.f32 %v1210_v62, %v443_v63  ;;  %v660_v43 = vmul.f32 %v584_v25, %v444_v1  ;;  %v661_v0 = vmul.f32 %v601_v26, %v445_v2  ;;  %v662_v37 = vmul.f32 %v618_v50, %v446_v7 }
 0x1b8   :  { %v663_v6 = vmul.f32 %v635_v3, %v447_v5  ;;  %v664_v38 = vmul.f32 %v652_v35, %v448_v33 }
 0x1b9   :  { %v875_v47 = vadd.f32 %v783_v45, %v659_v42  ;;  %v876_v39 = vadd.f32 %v800_v44, %v660_v43  ;;  %v877_v9 = vadd.f32 %v817_v58, %v661_v0  ;;  %v878_v46 = vadd.f32 %v834_v60, %v662_v37 }
 0x1ba   :  { %v879_v59 = vadd.f32 %v851_v40, %v663_v6  ;;  %v880_v14 = vadd.f32 %v868_v41, %v664_v38 }
 0x1bb   :  { %881 = vst [vmem:[%s1303_s3] sm:$0xff] %v875_v47  ;;  %882 = vst [vmem:[%s1303_s3 + $0x8] sm:$0xff] %v876_v39 }
 0x1bc   :  { %883 = vst [vmem:[%s1303_s3 + $0x10] sm:$0xff] %v877_v9  ;;  %884 = vst [vmem:[%s1303_s3 + $0x18] sm:$0xff] %v878_v46 }
 0x1bd   :  { %885 = vst [vmem:[%s1303_s3 + $0x20] sm:$0xff] %v879_v59  ;;  %892 = vst.msk [vmem:[%s1303_s3 + $0x28] sm:$0xff] %vm891_vm7, %v880_v14 }
 0x1be   :  { %897 = vsyncpa [#allocation3], 1 }
 0x1bf   :  { %898 = vsyncpa [#allocation5], 1 }

// kernel: forward.6
= control target key start
LH: loop header
LB: loop body
LE: loop exit
PB: predicated region body
PF: predicated region fallthrough
CT: control target
= control target key end

     0   :  { %s1077_s12 = smov 0   ;;  %s1079_s13 = smov 0   ;;  %s1264_s0 = inlined_call_operand.vmem [shape: bf16[16,128], index: 0, kind: input, shape index: {}]   ;;  %s1265_s1 = inlined_call_operand.vmem [shape: bf16[128,3072], index: 1, kind: input, shape index: {}]   ;;  %s1266_s2 = inlined_call_operand.vmem [shape: f32[16,1], index: 2, kind: input, shape index: {}]   ;;  %s1267_s3 = inlined_call_operand.vmem [shape: bf16[16,3072], index: 3, kind: output, shape index: {}]  }
   0x1   :  { %s1081_s14 = smov 0   ;;  %s1083_s15 = smov 0  }
   0x2   :  { %s1085_s16 = smov 0  }
   0x3 LB: > { %s28_s17 = sadd.s32 1, %s1050_s15  ;;  %s865_s18 = sadd.s32 4294967295, %s1054_s16   ;;  %s1054_s16 = sphi %s1085_s16, %s13_s16   ;;  %s1050_s15 = sphi %s1083_s15, %s1272_s15   ;;  %s1046_s14 = sphi %s1081_s14, %s1271_s14   ;;  %s1042_s13 = sphi %s1079_s13, %s1270_s13   ;;  %s1038_s12 = sphi %s1077_s12, %s1269_s12  }
   0x4   : > { %p30_p0 = scmp.ge.s32.totalorder %s28_s17, 6  ;;  %p76_p1 = scmp.ne.s32.totalorder %s1042_s13, %s1038_s12 }
   0x5   : > { %p77_p2 = scmp.eq.s32.totalorder %s1054_s16, 0  ;;  %p134_p4 = scmp.eq.s32.totalorder %s865_s18, 5 }
   0x6   : > { %s1274_s17 = smov (%p30_p0, %s28_s17), 0  ;;  %s69_s20 = sadd.s32 1, %s1042_s13 }
   0x7   : > { %p78_p3 = por %p77_p2, %p76_p1  ;;  %s65_s19 = ssub.s32 %s1050_s15, %s1274_s17 }
   0x8   : > { %p67_p5 = scmp.eq.s32.totalorder %s65_s19, 0  ;;  %p1112_p6 = por %p134_p4, %p76_p1 }
   0x9   : > { %p870_p7 = scmp.ge.s32.totalorder %s1054_s16, 6 }
   0xa   : > { %s1117_s22 = scalar_select %p67_p5, %s1042_s13, %s69_s20  }
   0xb   : > { %177 = sbr.rel (%p870_p7) target bundleno = 36 (0x24), region = 24 }
  0x10   : > { %180 = sbr.rel (!%p78_p3) target bundleno = 36 (0x24), region = 28  ;;  %s182_s23 = sand.u32 (%p78_p3), 1, %s1042_s13  }
  0x11   : > { %s919_s24 = sshll.u32 (%p78_p3), %s1050_s15, 4  ;;  %s871_s25 = sshll.u32 (%p78_p3), %s182_s23, 8 }
  0x12   : > { %s1125_s28 = scalar_lea.vmem (%p78_p3), %s1265_s1, %s919_s24  ;;  %s1130_s29 = scalar_lea.vmem (%p78_p3), [#allocation3], %s871_s25 }
  0x13   : > { %v203_v0 = vld [vmem:[%s1125_s28] sm:$0xff] (%p78_p3)  ;;  %v205_v1 = vld [vmem:[%s1125_s28 + $0x8] sm:$0xff] (%p78_p3) }
  0x14   : > { %v207_v2 = vld [vmem:[%s1125_s28 + $0x60] sm:$0xff] (%p78_p3)  ;;  %204 = vst [vmem:[%s1130_s29] sm:$0xff] (%p78_p3), %v203_v0  ;;  %206 = vst [vmem:[%s1130_s29 + $0x8] sm:$0xff] (%p78_p3), %v205_v1  ;;  %v209_v3 = vld [vmem:[%s1125_s28 + $0x68] sm:$0xff] (%p78_p3) }
  0x15   : > { %208 = vst [vmem:[%s1130_s29 + $0x10] sm:$0xff] %v207_v2  ;;  %v211_v4 = vld [vmem:[%s1125_s28 + $0xc0] sm:$0xff]  ;;  %v213_v5 = vld [vmem:[%s1125_s28 + $0xc8] sm:$0xff]  ;;  %210 = vst [vmem:[%s1130_s29 + $0x18] sm:$0xff] %v209_v3 }
  0x16   : > { %212 = vst [vmem:[%s1130_s29 + $0x20] sm:$0xff] %v211_v4  ;;  %214 = vst [vmem:[%s1130_s29 + $0x28] sm:$0xff] %v213_v5  ;;  %v215_v6 = vld [vmem:[%s1125_s28 + $0x120] sm:$0xff]  ;;  %v217_v7 = vld [vmem:[%s1125_s28 + $0x128] sm:$0xff] }
  0x17   : > { %v219_v8 = vld [vmem:[%s1125_s28 + $0x180] sm:$0xff]  ;;  %216 = vst [vmem:[%s1130_s29 + $0x30] sm:$0xff] %v215_v6  ;;  %218 = vst [vmem:[%s1130_s29 + $0x38] sm:$0xff] %v217_v7  ;;  %v221_v9 = vld [vmem:[%s1125_s28 + $0x188] sm:$0xff] }
  0x18   : > { %220 = vst [vmem:[%s1130_s29 + $0x40] sm:$0xff] %v219_v8  ;;  %v223_v10 = vld [vmem:[%s1125_s28 + $0x1e0] sm:$0xff]  ;;  %v225_v11 = vld [vmem:[%s1125_s28 + $0x1e8] sm:$0xff]  ;;  %222 = vst [vmem:[%s1130_s29 + $0x48] sm:$0xff] %v221_v9 }
  0x19   : > { %224 = vst [vmem:[%s1130_s29 + $0x50] sm:$0xff] %v223_v10  ;;  %226 = vst [vmem:[%s1130_s29 + $0x58] sm:$0xff] %v225_v11  ;;  %v227_v12 = vld [vmem:[%s1125_s28 + $0x240] sm:$0xff]  ;;  %v229_v13 = vld [vmem:[%s1125_s28 + $0x248] sm:$0xff] }
  0x1a   : > { %v231_v14 = vld [vmem:[%s1125_s28 + $0x2a0] sm:$0xff]  ;;  %228 = vst [vmem:[%s1130_s29 + $0x60] sm:$0xff] %v227_v12  ;;  %230 = vst [vmem:[%s1130_s29 + $0x68] sm:$0xff] %v229_v13  ;;  %v233_v15 = vld [vmem:[%s1125_s28 + $0x2a8] sm:$0xff] }
  0x1b   : > { %232 = vst [vmem:[%s1130_s29 + $0x70] sm:$0xff] %v231_v14  ;;  %v235_v16 = vld [vmem:[%s1125_s28 + $0x300] sm:$0xff]  ;;  %v237_v17 = vld [vmem:[%s1125_s28 + $0x308] sm:$0xff]  ;;  %234 = vst [vmem:[%s1130_s29 + $0x78] sm:$0xff] %v233_v15 }
  0x1c   : > { %236 = vst [vmem:[%s1130_s29 + $0x80] sm:$0xff] %v235_v16  ;;  %238 = vst [vmem:[%s1130_s29 + $0x88] sm:$0xff] %v237_v17  ;;  %v239_v18 = vld [vmem:[%s1125_s28 + $0x360] sm:$0xff]  ;;  %v241_v19 = vld [vmem:[%s1125_s28 + $0x368] sm:$0xff] }
  0x1d   : > { %v243_v20 = vld [vmem:[%s1125_s28 + $0x3c0] sm:$0xff]  ;;  %240 = vst [vmem:[%s1130_s29 + $0x90] sm:$0xff] %v239_v18  ;;  %242 = vst [vmem:[%s1130_s29 + $0x98] sm:$0xff] %v241_v19  ;;  %v245_v21 = vld [vmem:[%s1125_s28 + $0x3c8] sm:$0xff] }
  0x1e   : > { %244 = vst [vmem:[%s1130_s29 + $0xa0] sm:$0xff] %v243_v20  ;;  %v247_v22 = vld [vmem:[%s1125_s28 + $0x420] sm:$0xff]  ;;  %v249_v23 = vld [vmem:[%s1125_s28 + $0x428] sm:$0xff]  ;;  %246 = vst [vmem:[%s1130_s29 + $0xa8] sm:$0xff] %v245_v21 }
  0x1f   : > { %248 = vst [vmem:[%s1130_s29 + $0xb0] sm:$0xff] %v247_v22  ;;  %250 = vst [vmem:[%s1130_s29 + $0xb8] sm:$0xff] %v249_v23  ;;  %v251_v24 = vld [vmem:[%s1125_s28 + $0x480] sm:$0xff]  ;;  %v253_v25 = vld [vmem:[%s1125_s28 + $0x488] sm:$0xff] }
  0x20   : > { %v255_v26 = vld [vmem:[%s1125_s28 + $0x4e0] sm:$0xff]  ;;  %252 = vst [vmem:[%s1130_s29 + $0xc0] sm:$0xff] %v251_v24  ;;  %254 = vst [vmem:[%s1130_s29 + $0xc8] sm:$0xff] %v253_v25  ;;  %v257_v27 = vld [vmem:[%s1125_s28 + $0x4e8] sm:$0xff] }
  0x21   : > { %256 = vst [vmem:[%s1130_s29 + $0xd0] sm:$0xff] %v255_v26  ;;  %v259_v28 = vld [vmem:[%s1125_s28 + $0x540] sm:$0xff]  ;;  %v261_v29 = vld [vmem:[%s1125_s28 + $0x548] sm:$0xff]  ;;  %258 = vst [vmem:[%s1130_s29 + $0xd8] sm:$0xff] %v257_v27 }
  0x22   : > { %260 = vst [vmem:[%s1130_s29 + $0xe0] sm:$0xff] %v259_v28  ;;  %262 = vst [vmem:[%s1130_s29 + $0xe8] sm:$0xff] %v261_v29  ;;  %v263_v30 = vld [vmem:[%s1125_s28 + $0x5a0] sm:$0xff]  ;;  %v265_v31 = vld [vmem:[%s1125_s28 + $0x5a8] sm:$0xff] }
  0x23   : > { %264 = vst [vmem:[%s1130_s29 + $0xf0] sm:$0xff] %v263_v30  ;;  %266 = vst [vmem:[%s1130_s29 + $0xf8] sm:$0xff] %v265_v31 }
  0x24 PF: > { %p874_p8 = scmp.ge.s32.totalorder %s1054_s16, 1  ;;  %p271_p9 = scmp.lt.s32.totalorder %s1054_s16, 7 }
  0x26   : > { %p272_p10 = pnand %p874_p8, %p271_p9 }
  0x27   : > { %s278_s30 = sand.u32 (!%p272_p10), 1, %s1038_s12  }
  0x28   : > { %275 = sbr.rel (%p272_p10) target bundleno = 294 (0x126), region = 51  ;;  %s875_s4 = sshll.u32 (!%p272_p10), %s278_s30, 8 }
  0x29   : > { %s1201_s7 = scalar_lea.vmem (!%p272_p10), [#allocation3], %s875_s4  ;;  %s876_s18 = sshll.u32 (!%p272_p10), %s278_s30, 5 }
  0x2a   : > { %s312_s19 = scalar_lea.vmem (!%p272_p10), [#allocation4], %s876_s18 }
  0x2d   : > { %v1056_v32 = vmov 0   ;;  %v666_v33 = vld [vmem:[%s1266_s2] sm:$0xff]  ;;  %v667_v35 = vld [vmem:[%s1266_s2 + $0x8] sm:$0xff]  ;;  %s924_s12 = sshll.u32 (%p1112_p6), %s1046_s14, 4 }
  0x2e   : > { %585 = vmatprep.mubr.bf16.mxu0 %v1056_v32  ;;  %628 = vmatprep.mubr.bf16.mxu1 %v1056_v32  ;;  %v967_v34 = vld [vmem:[%s1201_s7 + $0xe4] ss:$16 sps:$4 sm:$0xff]   ;;  %v969_v36 = vld [vmem:[%s1201_s7 + $0xec] ss:$16 sps:$4 sm:$0xff]   ;;  %v971_v37 = vld [vmem:[%s1201_s7 + $0xe0] ss:$16 sps:$4 sm:$0xff]   ;;  %s734_s24 = scalar_lea.vmem (%p1112_p6), %s1267_s3, %s924_s12 }
  0x2f   : > { %966 = vset.pattern.permute.xlu0 %v1056_v32  ;;  %553 = vmatprep.subr.bf16.mxu0 %v967_v34  ;;  %v972_v38 = vld [vmem:[%s1201_s7 + $0xe8] ss:$16 sps:$4 sm:$0xff]   ;;  %v973_v39 = vld [vmem:[%s1201_s7 + $0xc4] ss:$16 sps:$4 sm:$0xff]   ;;  %v975_v40 = vld [vmem:[%s1201_s7 + $0xcc] ss:$16 sps:$4 sm:$0xff]  }
  0x30   : > { %670 = vperm.xlu0 %966, %v666_v33   ;;  %596 = vmatprep.subr.bf16.mxu1 %v969_v36  ;;  %v977_v41 = vld [vmem:[%s1201_s7 + $0xc0] ss:$16 sps:$4 sm:$0xff]   ;;  %v978_v42 = vld [vmem:[%s1201_s7 + $0xc8] ss:$16 sps:$4 sm:$0xff]   ;;  %v979_v43 = vld [vmem:[%s1201_s7 + $0xa4] ss:$16 sps:$4 sm:$0xff]  }
  0x31   : > { %554 = vmatpush1.bf16.msra.mxu0 %v971_v37  ;;  %597 = vmatpush1.bf16.msra.mxu1 %v972_v38  ;;  %v981_v44 = vld [vmem:[%s1201_s7 + $0xac] ss:$16 sps:$4 sm:$0xff]   ;;  %v983_v45 = vld [vmem:[%s1201_s7 + $0xa0] ss:$16 sps:$4 sm:$0xff]   ;;  %v984_v46 = vld [vmem:[%s1201_s7 + $0xa8] ss:$16 sps:$4 sm:$0xff]  }
  0x32   : > { %555 = vmatprep.subr.bf16.mxu0 %v973_v39  ;;  %598 = vmatprep.subr.bf16.mxu1 %v975_v40  ;;  %v985_v47 = vld [vmem:[%s1201_s7 + $0x84] ss:$16 sps:$4 sm:$0xff]   ;;  %v987_v48 = vld [vmem:[%s1201_s7 + $0x8c] ss:$16 sps:$4 sm:$0xff]   ;;  %v989_v49 = vld [vmem:[%s1201_s7 + $0x80] ss:$16 sps:$4 sm:$0xff]  }
  0x33   : > { %v990_v50 = vld [vmem:[%s1201_s7 + $0x88] ss:$16 sps:$4 sm:$0xff]   ;;  %v991_v51 = vld [vmem:[%s1201_s7 + $0x64] ss:$16 sps:$4 sm:$0xff]   ;;  %v993_v52 = vld [vmem:[%s1201_s7 + $0x6c] ss:$16 sps:$4 sm:$0xff]  }
  0x34   : > { %675 = vperm.xlu0 %966, %v667_v35   ;;  %v995_v53 = vld [vmem:[%s1201_s7 + $0x60] ss:$16 sps:$4 sm:$0xff]   ;;  %v996_v54 = vld [vmem:[%s1201_s7 + $0x68] ss:$16 sps:$4 sm:$0xff]   ;;  %v997_v55 = vld [vmem:[%s1201_s7 + $0x44] ss:$16 sps:$4 sm:$0xff]  }
  0x35   : > { %556 = vmatpush1.bf16.msra.mxu0 %v977_v41  ;;  %599 = vmatpush1.bf16.msra.mxu1 %v978_v42  ;;  %v999_v56 = vld [vmem:[%s1201_s7 + $0x4c] ss:$16 sps:$4 sm:$0xff]   ;;  %v1001_v57 = vld [vmem:[%s1201_s7 + $0x40] ss:$16 sps:$4 sm:$0xff]   ;;  %v1002_v58 = vld [vmem:[%s1201_s7 + $0x48] ss:$16 sps:$4 sm:$0xff]  }
  0x36   : > { %557 = vmatprep.subr.bf16.mxu0 %v979_v43  ;;  %600 = vmatprep.subr.bf16.mxu1 %v981_v44  ;;  %v1003_v59 = vld [vmem:[%s1201_s7 + $0x24] ss:$16 sps:$4 sm:$0xff]   ;;  %v1005_v60 = vld [vmem:[%s1201_s7 + $0x2c] ss:$16 sps:$4 sm:$0xff]   ;;  %v1007_v61 = vld [vmem:[%s1201_s7 + $0x20] ss:$16 sps:$4 sm:$0xff]  }
  0x37   : > { %v1008_v62 = vld [vmem:[%s1201_s7 + $0x28] ss:$16 sps:$4 sm:$0xff]   ;;  %v1009_v63 = vld [vmem:[%s1201_s7 + $0x4] ss:$16 sps:$4 sm:$0xff]   ;;  %v1011_v0 = vld [vmem:[%s1201_s7 + $0xc] ss:$16 sps:$4 sm:$0xff]  }
  0x38   : > { %v1013_v1 = vld [vmem:[%s1201_s7] ss:$16 sps:$4 sm:$0xff]   ;;  %v1014_v2 = vld [vmem:[%s1201_s7 + $0x8] ss:$16 sps:$4 sm:$0xff]  }
  0x39   : > { %558 = vmatpush1.bf16.msra.mxu0 %v983_v45  ;;  %601 = vmatpush1.bf16.msra.mxu1 %v984_v46  ;;  %v1015_v3 = vld [vmem:[%s1264_s0] sm:$0xff]  }
  0x3a   : > { %559 = vmatprep.subr.bf16.mxu0 %v985_v47  ;;  %602 = vmatprep.subr.bf16.mxu1 %v987_v48 }
  0x3d   : > { %560 = vmatpush1.bf16.msra.mxu0 %v989_v49  ;;  %603 = vmatpush1.bf16.msra.mxu1 %v990_v50 }
  0x3e   : > { %561 = vmatprep.subr.bf16.mxu0 %v991_v51  ;;  %604 = vmatprep.subr.bf16.mxu1 %v993_v52 }
  0x41   : > { %562 = vmatpush1.bf16.msra.mxu0 %v995_v53  ;;  %605 = vmatpush1.bf16.msra.mxu1 %v996_v54 }
  0x42   : > { %563 = vmatprep.subr.bf16.mxu0 %v997_v55  ;;  %606 = vmatprep.subr.bf16.mxu1 %v999_v56 }
  0x45   : > { %564 = vmatpush1.bf16.msra.mxu0 %v1001_v57  ;;  %607 = vmatpush1.bf16.msra.mxu1 %v1002_v58 }
  0x46   : > { %565 = vmatprep.subr.bf16.mxu0 %v1003_v59  ;;  %608 = vmatprep.subr.bf16.mxu1 %v1005_v60 }
  0x49   : > { %566 = vmatpush1.bf16.msra.mxu0 %v1007_v61  ;;  %609 = vmatpush1.bf16.msra.mxu1 %v1008_v62 }
  0x4a   : > { %567 = vmatprep.subr.bf16.mxu0 %v1009_v63  ;;  %610 = vmatprep.subr.bf16.mxu1 %v1011_v0 }
  0x4d   : > { %568 = vmatpush1.bf16.msra.mxu0 %v1013_v1  ;;  %611 = vmatpush1.bf16.msra.mxu1 %v1014_v2 }
  0x50   : > { %586 = vmatmul.mubr.bf16.vlgmr.msra.gmra.mxu0 %v1015_v3  ;;  %629 = vmatmul.mubr.bf16.vlgmr.msra.gmra.mxu1 %v1015_v3 }
  0xab   : > { %v671_v4 = vpop.permute.xlu0 %670 }
  0xaf   : > { %v676_v17 = vpop.permute.xlu0 %675 }
 0x110   : > { %v587_v5 = vpop.f32.mrf.mxu0  ;;  %v630_v6 = vpop.f32.mrf.mxu1 }
 0x111   : > { %v678_v7 = vadd.f32 %v671_v4, %v587_v5  ;;  %v680_v8 = vadd.f32 %v671_v4, %v630_v6 }
 0x112   : > { %v589_v9 = vpop.f32.mrf.mxu0  ;;  %v632_v10 = vpop.f32.mrf.mxu1 }
 0x113   : > { %v679_v11 = vadd.f32 %v671_v4, %v589_v9  ;;  %v681_v12 = vadd.f32 %v671_v4, %v632_v10  ;;  %v686_v15 = vmax.f32 %v678_v7, 0.0  ;;  %v688_v16 = vmax.f32 %v680_v8, 0.0 }
 0x114   : > { %v591_v13 = vpop.f32.mrf.mxu0  ;;  %v634_v14 = vpop.f32.mrf.mxu1 }
 0x115   : > { %v687_v18 = vmax.f32 %v679_v11, 0.0  ;;  %v689_v19 = vmax.f32 %v681_v12, 0.0  ;;  %v682_v20 = vadd.f32 %v676_v17, %v591_v13  ;;  %v684_v21 = vadd.f32 %v676_v17, %v634_v14 }
 0x116   : > { %v593_v22 = vpop.f32.mrf.mxu0  ;;  %v636_v23 = vpop.f32.mrf.mxu1 }
 0x117   : > { %v920_v24 = vpack.c.bf16 %v687_v18, %v686_v15  ;;  %v921_v25 = vpack.c.bf16 %v689_v19, %v688_v16  ;;  %v683_v26 = vadd.f32 %v676_v17, %v593_v22  ;;  %v685_v27 = vadd.f32 %v676_v17, %v636_v23 }
 0x118   : > { %v690_v28 = vmax.f32 %v682_v20, 0.0  ;;  %v692_v29 = vmax.f32 %v684_v21, 0.0 }
 0x119   : > { %718 = vst [vmem:[%s312_s19] sm:$0xff] %v920_v24  ;;  %719 = vst [vmem:[%s312_s19 + $0x8] sm:$0xff] %v921_v25  ;;  %v691_v30 = vmax.f32 %v683_v26, 0.0  ;;  %v693_v31 = vmax.f32 %v685_v27, 0.0  ;;  %728 = sbr.rel (!%p1112_p6) target bundleno = 294 (0x126), region = 67 }
 0x11b   : > { %v922_v32 = vpack.c.bf16 %v691_v30, %v690_v28  ;;  %v923_v33 = vpack.c.bf16 %v693_v31, %v692_v29 }
 0x11d   : > { %720 = vst [vmem:[%s312_s19 + $0x10] sm:$0xff] %v922_v32  ;;  %721 = vst [vmem:[%s312_s19 + $0x18] sm:$0xff] %v923_v33 }
 0x120   : > { %v747_v34 = vld [vmem:[%s312_s19] sm:$0xff]  ;;  %v749_v35 = vld [vmem:[%s312_s19 + $0x8] sm:$0xff] }
 0x121   : > { %748 = vst [vmem:[%s734_s24] sm:$0xff] %v747_v34  ;;  %750 = vst [vmem:[%s734_s24 + $0x8] sm:$0xff] %v749_v35 }
 0x124   : > { %v751_v36 = vld [vmem:[%s312_s19 + $0x10] sm:$0xff]  ;;  %v753_v37 = vld [vmem:[%s312_s19 + $0x18] sm:$0xff] }
 0x125   : > { %752 = vst [vmem:[%s734_s24 + $0x60] sm:$0xff] %v751_v36  ;;  %754 = vst [vmem:[%s734_s24 + $0x68] sm:$0xff] %v753_v37 }
 0x126 PF: > { %s13_s16 = sadd.s32 1, %s1054_s16   ;;  %s1269_s12 = smov %s1042_s13 }
 0x127   : > { %p10_p11 = scmp.ge.s32.totalorder %s13_s16, 8   ;;  %s1270_s13 = smov %s1117_s22 }
 0x128   : > { %s1271_s14 = smov %s1050_s15  ;;  %s1272_s15 = smov %s1274_s17 }
 0x129   :  { %12 = sbr.rel (!%p10_p11) target bundleno = 3 (0x3), region = 127 }

// kernel: forward.7
= control target key start
LH: loop header
LB: loop body
LE: loop exit
PB: predicated region body
PF: predicated region fallthrough
CT: control target
= control target key end

     0   :  { %s1077_s12 = smov 0   ;;  %s1079_s13 = smov 0   ;;  %s1264_s0 = inlined_call_operand.vmem [shape: bf16[16,128], index: 0, kind: input, shape index: {}]   ;;  %s1265_s1 = inlined_call_operand.vmem [shape: bf16[128,1024], index: 1, kind: input, shape index: {}]   ;;  %s1266_s2 = inlined_call_operand.vmem [shape: f32[16,1], index: 2, kind: input, shape index: {}]   ;;  %s1267_s3 = inlined_call_operand.vmem [shape: bf16[16,1024], index: 3, kind: output, shape index: {}]  }
   0x1   :  { %s1081_s14 = smov 0   ;;  %s1083_s15 = smov 0  }
   0x2   :  { %s1085_s16 = smov 0  }
   0x3 LB: > { %s28_s17 = sadd.s32 1, %s1050_s15  ;;  %s865_s18 = sadd.s32 4294967295, %s1054_s16   ;;  %s1054_s16 = sphi %s1085_s16, %s13_s16   ;;  %s1050_s15 = sphi %s1083_s15, %s1272_s15   ;;  %s1046_s14 = sphi %s1081_s14, %s1271_s14   ;;  %s1042_s13 = sphi %s1079_s13, %s1270_s13   ;;  %s1038_s12 = sphi %s1077_s12, %s1269_s12  }
   0x4   : > { %p30_p0 = scmp.ge.s32.totalorder %s28_s17, 2  ;;  %p76_p1 = scmp.ne.s32.totalorder %s1042_s13, %s1038_s12 }
   0x5   : > { %p77_p2 = scmp.eq.s32.totalorder %s1054_s16, 0  ;;  %p134_p4 = scmp.eq.s32.totalorder %s865_s18, 1 }
   0x6   : > { %s1274_s17 = smov (%p30_p0, %s28_s17), 0  ;;  %s69_s20 = sadd.s32 1, %s1042_s13 }
   0x7   : > { %p78_p3 = por %p77_p2, %p76_p1  ;;  %s65_s19 = ssub.s32 %s1050_s15, %s1274_s17 }
   0x8   : > { %p67_p5 = scmp.eq.s32.totalorder %s65_s19, 0  ;;  %p1112_p6 = por %p134_p4, %p76_p1 }
   0x9   : > { %p870_p7 = scmp.ge.s32.totalorder %s1054_s16, 2 }
   0xa   : > { %s1117_s22 = scalar_select %p67_p5, %s1042_s13, %s69_s20  }
   0xb   : > { %177 = sbr.rel (%p870_p7) target bundleno = 36 (0x24), region = 24 }
  0x10   : > { %180 = sbr.rel (!%p78_p3) target bundleno = 36 (0x24), region = 28  ;;  %s182_s23 = sand.u32 (%p78_p3), 1, %s1042_s13  }
  0x11   : > { %s919_s24 = sshll.u32 (%p78_p3), %s1050_s15, 4  ;;  %s871_s25 = sshll.u32 (%p78_p3), %s182_s23, 8 }
  0x12   : > { %s1125_s28 = scalar_lea.vmem (%p78_p3), %s1265_s1, %s919_s24  ;;  %s1130_s29 = scalar_lea.vmem (%p78_p3), [#allocation3], %s871_s25 }
  0x13   : > { %v203_v0 = vld [vmem:[%s1125_s28] sm:$0xff] (%p78_p3)  ;;  %v205_v1 = vld [vmem:[%s1125_s28 + $0x8] sm:$0xff] (%p78_p3) }
  0x14   : > { %v207_v2 = vld [vmem:[%s1125_s28 + $0x20] sm:$0xff] (%p78_p3)  ;;  %204 = vst [vmem:[%s1130_s29] sm:$0xff] (%p78_p3), %v203_v0  ;;  %206 = vst [vmem:[%s1130_s29 + $0x8] sm:$0xff] (%p78_p3), %v205_v1  ;;  %v209_v3 = vld [vmem:[%s1125_s28 + $0x28] sm:$0xff] (%p78_p3) }
  0x15   : > { %208 = vst [vmem:[%s1130_s29 + $0x10] sm:$0xff] %v207_v2  ;;  %v211_v4 = vld [vmem:[%s1125_s28 + $0x40] sm:$0xff]  ;;  %v213_v5 = vld [vmem:[%s1125_s28 + $0x48] sm:$0xff]  ;;  %210 = vst [vmem:[%s1130_s29 + $0x18] sm:$0xff] %v209_v3 }
  0x16   : > { %212 = vst [vmem:[%s1130_s29 + $0x20] sm:$0xff] %v211_v4  ;;  %214 = vst [vmem:[%s1130_s29 + $0x28] sm:$0xff] %v213_v5  ;;  %v215_v6 = vld [vmem:[%s1125_s28 + $0x60] sm:$0xff]  ;;  %v217_v7 = vld [vmem:[%s1125_s28 + $0x68] sm:$0xff] }
  0x17   : > { %v219_v8 = vld [vmem:[%s1125_s28 + $0x80] sm:$0xff]  ;;  %216 = vst [vmem:[%s1130_s29 + $0x30] sm:$0xff] %v215_v6  ;;  %218 = vst [vmem:[%s1130_s29 + $0x38] sm:$0xff] %v217_v7  ;;  %v221_v9 = vld [vmem:[%s1125_s28 + $0x88] sm:$0xff] }
  0x18   : > { %220 = vst [vmem:[%s1130_s29 + $0x40] sm:$0xff] %v219_v8  ;;  %v223_v10 = vld [vmem:[%s1125_s28 + $0xa0] sm:$0xff]  ;;  %v225_v11 = vld [vmem:[%s1125_s28 + $0xa8] sm:$0xff]  ;;  %222 = vst [vmem:[%s1130_s29 + $0x48] sm:$0xff] %v221_v9 }
  0x19   : > { %224 = vst [vmem:[%s1130_s29 + $0x50] sm:$0xff] %v223_v10  ;;  %226 = vst [vmem:[%s1130_s29 + $0x58] sm:$0xff] %v225_v11  ;;  %v227_v12 = vld [vmem:[%s1125_s28 + $0xc0] sm:$0xff]  ;;  %v229_v13 = vld [vmem:[%s1125_s28 + $0xc8] sm:$0xff] }
  0x1a   : > { %v231_v14 = vld [vmem:[%s1125_s28 + $0xe0] sm:$0xff]  ;;  %228 = vst [vmem:[%s1130_s29 + $0x60] sm:$0xff] %v227_v12  ;;  %230 = vst [vmem:[%s1130_s29 + $0x68] sm:$0xff] %v229_v13  ;;  %v233_v15 = vld [vmem:[%s1125_s28 + $0xe8] sm:$0xff] }
  0x1b   : > { %232 = vst [vmem:[%s1130_s29 + $0x70] sm:$0xff] %v231_v14  ;;  %v235_v16 = vld [vmem:[%s1125_s28 + $0x100] sm:$0xff]  ;;  %v237_v17 = vld [vmem:[%s1125_s28 + $0x108] sm:$0xff]  ;;  %234 = vst [vmem:[%s1130_s29 + $0x78] sm:$0xff] %v233_v15 }
  0x1c   : > { %236 = vst [vmem:[%s1130_s29 + $0x80] sm:$0xff] %v235_v16  ;;  %238 = vst [vmem:[%s1130_s29 + $0x88] sm:$0xff] %v237_v17  ;;  %v239_v18 = vld [vmem:[%s1125_s28 + $0x120] sm:$0xff]  ;;  %v241_v19 = vld [vmem:[%s1125_s28 + $0x128] sm:$0xff] }
  0x1d   : > { %v243_v20 = vld [vmem:[%s1125_s28 + $0x140] sm:$0xff]  ;;  %240 = vst [vmem:[%s1130_s29 + $0x90] sm:$0xff] %v239_v18  ;;  %242 = vst [vmem:[%s1130_s29 + $0x98] sm:$0xff] %v241_v19  ;;  %v245_v21 = vld [vmem:[%s1125_s28 + $0x148] sm:$0xff] }
  0x1e   : > { %244 = vst [vmem:[%s1130_s29 + $0xa0] sm:$0xff] %v243_v20  ;;  %v247_v22 = vld [vmem:[%s1125_s28 + $0x160] sm:$0xff]  ;;  %v249_v23 = vld [vmem:[%s1125_s28 + $0x168] sm:$0xff]  ;;  %246 = vst [vmem:[%s1130_s29 + $0xa8] sm:$0xff] %v245_v21 }
  0x1f   : > { %248 = vst [vmem:[%s1130_s29 + $0xb0] sm:$0xff] %v247_v22  ;;  %250 = vst [vmem:[%s1130_s29 + $0xb8] sm:$0xff] %v249_v23  ;;  %v251_v24 = vld [vmem:[%s1125_s28 + $0x180] sm:$0xff]  ;;  %v253_v25 = vld [vmem:[%s1125_s28 + $0x188] sm:$0xff] }
  0x20   : > { %v255_v26 = vld [vmem:[%s1125_s28 + $0x1a0] sm:$0xff]  ;;  %252 = vst [vmem:[%s1130_s29 + $0xc0] sm:$0xff] %v251_v24  ;;  %254 = vst [vmem:[%s1130_s29 + $0xc8] sm:$0xff] %v253_v25  ;;  %v257_v27 = vld [vmem:[%s1125_s28 + $0x1a8] sm:$0xff] }
  0x21   : > { %256 = vst [vmem:[%s1130_s29 + $0xd0] sm:$0xff] %v255_v26  ;;  %v259_v28 = vld [vmem:[%s1125_s28 + $0x1c0] sm:$0xff]  ;;  %v261_v29 = vld [vmem:[%s1125_s28 + $0x1c8] sm:$0xff]  ;;  %258 = vst [vmem:[%s1130_s29 + $0xd8] sm:$0xff] %v257_v27 }
  0x22   : > { %260 = vst [vmem:[%s1130_s29 + $0xe0] sm:$0xff] %v259_v28  ;;  %262 = vst [vmem:[%s1130_s29 + $0xe8] sm:$0xff] %v261_v29  ;;  %v263_v30 = vld [vmem:[%s1125_s28 + $0x1e0] sm:$0xff]  ;;  %v265_v31 = vld [vmem:[%s1125_s28 + $0x1e8] sm:$0xff] }
  0x23   : > { %264 = vst [vmem:[%s1130_s29 + $0xf0] sm:$0xff] %v263_v30  ;;  %266 = vst [vmem:[%s1130_s29 + $0xf8] sm:$0xff] %v265_v31 }
  0x24 PF: > { %p874_p8 = scmp.ge.s32.totalorder %s1054_s16, 1  ;;  %p271_p9 = scmp.lt.s32.totalorder %s1054_s16, 3 }
  0x26   : > { %p272_p10 = pnand %p874_p8, %p271_p9 }
  0x27   : > { %s278_s30 = sand.u32 (!%p272_p10), 1, %s1038_s12  }
  0x28   : > { %275 = sbr.rel (%p272_p10) target bundleno = 294 (0x126), region = 51  ;;  %s875_s4 = sshll.u32 (!%p272_p10), %s278_s30, 8 }
  0x29   : > { %s1201_s7 = scalar_lea.vmem (!%p272_p10), [#allocation3], %s875_s4  ;;  %s876_s18 = sshll.u32 (!%p272_p10), %s278_s30, 5 }
  0x2a   : > { %s312_s19 = scalar_lea.vmem (!%p272_p10), [#allocation4], %s876_s18 }
  0x2d   : > { %v1056_v32 = vmov 0   ;;  %v666_v33 = vld [vmem:[%s1266_s2] sm:$0xff]  ;;  %v667_v35 = vld [vmem:[%s1266_s2 + $0x8] sm:$0xff]  ;;  %s924_s12 = sshll.u32 (%p1112_p6), %s1046_s14, 4 }
  0x2e   : > { %585 = vmatprep.mubr.bf16.mxu0 %v1056_v32  ;;  %628 = vmatprep.mubr.bf16.mxu1 %v1056_v32  ;;  %v967_v34 = vld [vmem:[%s1201_s7 + $0xe4] ss:$16 sps:$4 sm:$0xff]   ;;  %v969_v36 = vld [vmem:[%s1201_s7 + $0xec] ss:$16 sps:$4 sm:$0xff]   ;;  %v971_v37 = vld [vmem:[%s1201_s7 + $0xe0] ss:$16 sps:$4 sm:$0xff]   ;;  %s734_s24 = scalar_lea.vmem (%p1112_p6), %s1267_s3, %s924_s12 }
  0x2f   : > { %966 = vset.pattern.permute.xlu0 %v1056_v32  ;;  %553 = vmatprep.subr.bf16.mxu0 %v967_v34  ;;  %v972_v38 = vld [vmem:[%s1201_s7 + $0xe8] ss:$16 sps:$4 sm:$0xff]   ;;  %v973_v39 = vld [vmem:[%s1201_s7 + $0xc4] ss:$16 sps:$4 sm:$0xff]   ;;  %v975_v40 = vld [vmem:[%s1201_s7 + $0xcc] ss:$16 sps:$4 sm:$0xff]  }
  0x30   : > { %670 = vperm.xlu0 %966, %v666_v33   ;;  %596 = vmatprep.subr.bf16.mxu1 %v969_v36  ;;  %v977_v41 = vld [vmem:[%s1201_s7 + $0xc0] ss:$16 sps:$4 sm:$0xff]   ;;  %v978_v42 = vld [vmem:[%s1201_s7 + $0xc8] ss:$16 sps:$4 sm:$0xff]   ;;  %v979_v43 = vld [vmem:[%s1201_s7 + $0xa4] ss:$16 sps:$4 sm:$0xff]  }
  0x31   : > { %554 = vmatpush1.bf16.msra.mxu0 %v971_v37  ;;  %597 = vmatpush1.bf16.msra.mxu1 %v972_v38  ;;  %v981_v44 = vld [vmem:[%s1201_s7 + $0xac] ss:$16 sps:$4 sm:$0xff]   ;;  %v983_v45 = vld [vmem:[%s1201_s7 + $0xa0] ss:$16 sps:$4 sm:$0xff]   ;;  %v984_v46 = vld [vmem:[%s1201_s7 + $0xa8] ss:$16 sps:$4 sm:$0xff]  }
  0x32   : > { %555 = vmatprep.subr.bf16.mxu0 %v973_v39  ;;  %598 = vmatprep.subr.bf16.mxu1 %v975_v40  ;;  %v985_v47 = vld [vmem:[%s1201_s7 + $0x84] ss:$16 sps:$4 sm:$0xff]   ;;  %v987_v48 = vld [vmem:[%s1201_s7 + $0x8c] ss:$16 sps:$4 sm:$0xff]   ;;  %v989_v49 = vld [vmem:[%s1201_s7 + $0x80] ss:$16 sps:$4 sm:$0xff]  }
  0x33   : > { %v990_v50 = vld [vmem:[%s1201_s7 + $0x88] ss:$16 sps:$4 sm:$0xff]   ;;  %v991_v51 = vld [vmem:[%s1201_s7 + $0x64] ss:$16 sps:$4 sm:$0xff]   ;;  %v993_v52 = vld [vmem:[%s1201_s7 + $0x6c] ss:$16 sps:$4 sm:$0xff]  }
  0x34   : > { %675 = vperm.xlu0 %966, %v667_v35   ;;  %v995_v53 = vld [vmem:[%s1201_s7 + $0x60] ss:$16 sps:$4 sm:$0xff]   ;;  %v996_v54 = vld [vmem:[%s1201_s7 + $0x68] ss:$16 sps:$4 sm:$0xff]   ;;  %v997_v55 = vld [vmem:[%s1201_s7 + $0x44] ss:$16 sps:$4 sm:$0xff]  }
  0x35   : > { %556 = vmatpush1.bf16.msra.mxu0 %v977_v41  ;;  %599 = vmatpush1.bf16.msra.mxu1 %v978_v42  ;;  %v999_v56 = vld [vmem:[%s1201_s7 + $0x4c] ss:$16 sps:$4 sm:$0xff]   ;;  %v1001_v57 = vld [vmem:[%s1201_s7 + $0x40] ss:$16 sps:$4 sm:$0xff]   ;;  %v1002_v58 = vld [vmem:[%s1201_s7 + $0x48] ss:$16 sps:$4 sm:$0xff]  }
  0x36   : > { %557 = vmatprep.subr.bf16.mxu0 %v979_v43  ;;  %600 = vmatprep.subr.bf16.mxu1 %v981_v44  ;;  %v1003_v59 = vld [vmem:[%s1201_s7 + $0x24] ss:$16 sps:$4 sm:$0xff]   ;;  %v1005_v60 = vld [vmem:[%s1201_s7 + $0x2c] ss:$16 sps:$4 sm:$0xff]   ;;  %v1007_v61 = vld [vmem:[%s1201_s7 + $0x20] ss:$16 sps:$4 sm:$0xff]  }
  0x37   : > { %v1008_v62 = vld [vmem:[%s1201_s7 + $0x28] ss:$16 sps:$4 sm:$0xff]   ;;  %v1009_v63 = vld [vmem:[%s1201_s7 + $0x4] ss:$16 sps:$4 sm:$0xff]   ;;  %v1011_v0 = vld [vmem:[%s1201_s7 + $0xc] ss:$16 sps:$4 sm:$0xff]  }
  0x38   : > { %v1013_v1 = vld [vmem:[%s1201_s7] ss:$16 sps:$4 sm:$0xff]   ;;  %v1014_v2 = vld [vmem:[%s1201_s7 + $0x8] ss:$16 sps:$4 sm:$0xff]  }
  0x39   : > { %558 = vmatpush1.bf16.msra.mxu0 %v983_v45  ;;  %601 = vmatpush1.bf16.msra.mxu1 %v984_v46  ;;  %v1015_v3 = vld [vmem:[%s1264_s0] sm:$0xff]  }
  0x3a   : > { %559 = vmatprep.subr.bf16.mxu0 %v985_v47  ;;  %602 = vmatprep.subr.bf16.mxu1 %v987_v48 }
  0x3d   : > { %560 = vmatpush1.bf16.msra.mxu0 %v989_v49  ;;  %603 = vmatpush1.bf16.msra.mxu1 %v990_v50 }
  0x3e   : > { %561 = vmatprep.subr.bf16.mxu0 %v991_v51  ;;  %604 = vmatprep.subr.bf16.mxu1 %v993_v52 }
  0x41   : > { %562 = vmatpush1.bf16.msra.mxu0 %v995_v53  ;;  %605 = vmatpush1.bf16.msra.mxu1 %v996_v54 }
  0x42   : > { %563 = vmatprep.subr.bf16.mxu0 %v997_v55  ;;  %606 = vmatprep.subr.bf16.mxu1 %v999_v56 }
  0x45   : > { %564 = vmatpush1.bf16.msra.mxu0 %v1001_v57  ;;  %607 = vmatpush1.bf16.msra.mxu1 %v1002_v58 }
  0x46   : > { %565 = vmatprep.subr.bf16.mxu0 %v1003_v59  ;;  %608 = vmatprep.subr.bf16.mxu1 %v1005_v60 }
  0x49   : > { %566 = vmatpush1.bf16.msra.mxu0 %v1007_v61  ;;  %609 = vmatpush1.bf16.msra.mxu1 %v1008_v62 }
  0x4a   : > { %567 = vmatprep.subr.bf16.mxu0 %v1009_v63  ;;  %610 = vmatprep.subr.bf16.mxu1 %v1011_v0 }
  0x4d   : > { %568 = vmatpush1.bf16.msra.mxu0 %v1013_v1  ;;  %611 = vmatpush1.bf16.msra.mxu1 %v1014_v2 }
  0x50   : > { %586 = vmatmul.mubr.bf16.vlgmr.msra.gmra.mxu0 %v1015_v3  ;;  %629 = vmatmul.mubr.bf16.vlgmr.msra.gmra.mxu1 %v1015_v3 }
  0xab   : > { %v671_v4 = vpop.permute.xlu0 %670 }
  0xaf   : > { %v676_v17 = vpop.permute.xlu0 %675 }
 0x110   : > { %v587_v5 = vpop.f32.mrf.mxu0  ;;  %v630_v6 = vpop.f32.mrf.mxu1 }
 0x111   : > { %v678_v7 = vadd.f32 %v671_v4, %v587_v5  ;;  %v680_v8 = vadd.f32 %v671_v4, %v630_v6 }
 0x112   : > { %v589_v9 = vpop.f32.mrf.mxu0  ;;  %v632_v10 = vpop.f32.mrf.mxu1 }
 0x113   : > { %v679_v11 = vadd.f32 %v671_v4, %v589_v9  ;;  %v681_v12 = vadd.f32 %v671_v4, %v632_v10  ;;  %v686_v15 = vmax.f32 %v678_v7, 0.0  ;;  %v688_v16 = vmax.f32 %v680_v8, 0.0 }
 0x114   : > { %v591_v13 = vpop.f32.mrf.mxu0  ;;  %v634_v14 = vpop.f32.mrf.mxu1 }
 0x115   : > { %v687_v18 = vmax.f32 %v679_v11, 0.0  ;;  %v689_v19 = vmax.f32 %v681_v12, 0.0  ;;  %v682_v20 = vadd.f32 %v676_v17, %v591_v13  ;;  %v684_v21 = vadd.f32 %v676_v17, %v634_v14 }
 0x116   : > { %v593_v22 = vpop.f32.mrf.mxu0  ;;  %v636_v23 = vpop.f32.mrf.mxu1 }
 0x117   : > { %v920_v24 = vpack.c.bf16 %v687_v18, %v686_v15  ;;  %v921_v25 = vpack.c.bf16 %v689_v19, %v688_v16  ;;  %v683_v26 = vadd.f32 %v676_v17, %v593_v22  ;;  %v685_v27 = vadd.f32 %v676_v17, %v636_v23 }
 0x118   : > { %v690_v28 = vmax.f32 %v682_v20, 0.0  ;;  %v692_v29 = vmax.f32 %v684_v21, 0.0 }
 0x119   : > { %718 = vst [vmem:[%s312_s19] sm:$0xff] %v920_v24  ;;  %719 = vst [vmem:[%s312_s19 + $0x8] sm:$0xff] %v921_v25  ;;  %v691_v30 = vmax.f32 %v683_v26, 0.0  ;;  %v693_v31 = vmax.f32 %v685_v27, 0.0  ;;  %728 = sbr.rel (!%p1112_p6) target bundleno = 294 (0x126), region = 67 }
 0x11b   : > { %v922_v32 = vpack.c.bf16 %v691_v30, %v690_v28  ;;  %v923_v33 = vpack.c.bf16 %v693_v31, %v692_v29 }
 0x11d   : > { %720 = vst [vmem:[%s312_s19 + $0x10] sm:$0xff] %v922_v32  ;;  %721 = vst [vmem:[%s312_s19 + $0x18] sm:$0xff] %v923_v33 }
 0x120   : > { %v747_v34 = vld [vmem:[%s312_s19] sm:$0xff]  ;;  %v749_v35 = vld [vmem:[%s312_s19 + $0x8] sm:$0xff] }
 0x121   : > { %748 = vst [vmem:[%s734_s24] sm:$0xff] %v747_v34  ;;  %750 = vst [vmem:[%s734_s24 + $0x8] sm:$0xff] %v749_v35 }
 0x124   : > { %v751_v36 = vld [vmem:[%s312_s19 + $0x10] sm:$0xff]  ;;  %v753_v37 = vld [vmem:[%s312_s19 + $0x18] sm:$0xff] }
 0x125   : > { %752 = vst [vmem:[%s734_s24 + $0x20] sm:$0xff] %v751_v36  ;;  %754 = vst [vmem:[%s734_s24 + $0x28] sm:$0xff] %v753_v37 }
 0x126 PF: > { %s13_s16 = sadd.s32 1, %s1054_s16   ;;  %s1269_s12 = smov %s1042_s13 }
 0x127   : > { %p10_p11 = scmp.ge.s32.totalorder %s13_s16, 4   ;;  %s1270_s13 = smov %s1117_s22 }
 0x128   : > { %s1271_s14 = smov %s1050_s15  ;;  %s1272_s15 = smov %s1274_s17 }
 0x129   :  { %12 = sbr.rel (!%p10_p11) target bundleno = 3 (0x3), region = 127 }

// kernel: forward.8
= control target key start
LH: loop header
LB: loop body
LE: loop exit
PB: predicated region body
PF: predicated region fallthrough
CT: control target
= control target key end

     0   :  { %v407_v1 = vmov 0   ;;  %s506_s1 = inlined_call_operand.vmem [shape: bf16[256,128], index: 1, kind: input, shape index: {}]   ;;  %s507_s0 = inlined_call_operand.vmem [shape: bf16[32,256], index: 0, kind: input, shape index: {}]   ;;  %s508_s2 = inlined_call_operand.vmem [shape: f32[32,1], index: 2, kind: input, shape index: {}]   ;;  %s509_s3 = inlined_call_operand.vmem [shape: bf16[32,128], index: 3, kind: output, shape index: {}]  }
   0x1   :  { %v385_v0 = vld [vmem:[%s506_s1 + $0x78] sm:$0xff]   ;;  %384 = vset.pattern.permute.xlu1 %v407_v1  ;;  %383 = vset.pattern.permute.xlu0 %v407_v1  ;;  %v387_v3 = vld [vmem:[%s506_s1 + $0x70] sm:$0xff]   ;;  %v389_v5 = vld [vmem:[%s506_s1 + $0x68] sm:$0xff]  }
   0x2   :  { %v386_v2 = vld [vmem:[%s506_s1 + $0x38] sm:$0xff]   ;;  %338 = vmatprep.subr.bf16.mxu0 %v385_v0  ;;  %366 = vmatprep.subr.bf16.mxu1 %v385_v0  ;;  %v388_v4 = vld [vmem:[%s506_s1 + $0x30] sm:$0xff]   ;;  %v390_v6 = vld [vmem:[%s506_s1 + $0x28] sm:$0xff]  }
   0x3   :  { %339 = vmatpush3.bf16.msra.mxu0 %v386_v2  ;;  %374 = vmatpush3.bf16.msra.mxu1 %v386_v2  ;;  %v391_v7 = vld [vmem:[%s506_s1 + $0x60] sm:$0xff]   ;;  %v393_v9 = vld [vmem:[%s506_s1 + $0x58] sm:$0xff]   ;;  %v395_v11 = vld [vmem:[%s506_s1 + $0x50] sm:$0xff]  }
   0x4   :  { %340 = vmatprep.subr.bf16.mxu0 %v387_v3  ;;  %367 = vmatprep.subr.bf16.mxu1 %v387_v3  ;;  %v392_v8 = vld [vmem:[%s506_s1 + $0x20] sm:$0xff]   ;;  %v394_v10 = vld [vmem:[%s506_s1 + $0x18] sm:$0xff]   ;;  %v396_v14 = vld [vmem:[%s506_s1 + $0x10] sm:$0xff]  }
   0x5   :  { %v403_v12 = vld [vmem:[%s507_s0 + $0x4] ss:$8 sps:$4 sm:$0xff]   ;;  %v406_v13 = vld [vmem:[%s507_s0 + $0x14] ss:$8 sps:$4 sm:$0xff]   ;;  %v401_v23 = vld [vmem:[%s507_s0] ss:$8 sps:$4 sm:$0xff]  }
   0x6   :  { %v245_v15 = vld [vmem:[%s508_s2 + $0x10] sm:$0xff]  ;;  %v243_v16 = vld [vmem:[%s508_s2] sm:$0xff]  ;;  %v397_v17 = vld [vmem:[%s506_s1 + $0x48] sm:$0xff]   ;;  %211 = vmatprep.mubr.bf16.mxu0 %v403_v12  ;;  %219 = vmatprep.mubr.bf16.mxu1 %v406_v13 }
   0x7   :  { %341 = vmatpush3.bf16.msra.mxu0 %v388_v4  ;;  %375 = vmatpush3.bf16.msra.mxu1 %v388_v4  ;;  %v398_v18 = vld [vmem:[%s506_s1 + $0x8] sm:$0xff]   ;;  %v246_v19 = vld [vmem:[%s508_s2 + $0x18] sm:$0xff]  ;;  %v399_v21 = vld [vmem:[%s506_s1 + $0x40] sm:$0xff]  }
   0x8   :  { %342 = vmatprep.subr.bf16.mxu0 %v389_v5  ;;  %368 = vmatprep.subr.bf16.mxu1 %v389_v5  ;;  %v244_v20 = vld [vmem:[%s508_s2 + $0x8] sm:$0xff]  ;;  %v400_v22 = vld [vmem:[%s506_s1] sm:$0xff]   ;;  %v404_v24 = vld [vmem:[%s507_s0 + $0x10] ss:$8 sps:$4 sm:$0xff]  }
   0x9   :  { %259 = vperm.xlu1 %384, %v245_v15   ;;  %249 = vperm.xlu0 %383, %v243_v16  }
   0xb   :  { %343 = vmatpush3.bf16.msra.mxu0 %v390_v6  ;;  %376 = vmatpush3.bf16.msra.mxu1 %v390_v6 }
   0xc   :  { %344 = vmatprep.subr.bf16.mxu0 %v391_v7  ;;  %369 = vmatprep.subr.bf16.mxu1 %v391_v7 }
   0xd   :  { %264 = vperm.xlu1 %384, %v246_v19   ;;  %254 = vperm.xlu0 %383, %v244_v20  }
   0xf   :  { %345 = vmatpush3.bf16.msra.mxu0 %v392_v8  ;;  %377 = vmatpush3.bf16.msra.mxu1 %v392_v8 }
  0x10   :  { %346 = vmatprep.subr.bf16.mxu0 %v393_v9  ;;  %370 = vmatprep.subr.bf16.mxu1 %v393_v9 }
  0x13   :  { %347 = vmatpush3.bf16.msra.mxu0 %v394_v10  ;;  %378 = vmatpush3.bf16.msra.mxu1 %v394_v10 }
  0x14   :  { %348 = vmatprep.subr.bf16.mxu0 %v395_v11  ;;  %371 = vmatprep.subr.bf16.mxu1 %v395_v11 }
  0x17   :  { %349 = vmatpush3.bf16.msra.mxu0 %v396_v14  ;;  %379 = vmatpush3.bf16.msra.mxu1 %v396_v14 }
  0x18   :  { %350 = vmatprep.subr.bf16.mxu0 %v397_v17  ;;  %372 = vmatprep.subr.bf16.mxu1 %v397_v17 }
  0x1b   :  { %351 = vmatpush3.bf16.msra.mxu0 %v398_v18  ;;  %380 = vmatpush3.bf16.msra.mxu1 %v398_v18 }
  0x1c   :  { %352 = vmatprep.subr.bf16.mxu0 %v399_v21  ;;  %373 = vmatprep.subr.bf16.mxu1 %v399_v21 }
  0x1f   :  { %353 = vmatpush3.bf16.msra.mxu0 %v400_v22  ;;  %381 = vmatpush3.bf16.msra.mxu1 %v400_v22 }
  0x22   :  { %212 = vmatmul.mubr.bf16.vlgmr.msra.gmra.mxu0 %v401_v23  ;;  %220 = vmatmul.mubr.bf16.vlgmr.msra.gmra.mxu1 %v404_v24 }
  0x84   :  { %v260_v27 = vpop.permute.xlu1 %259  ;;  %v250_v28 = vpop.permute.xlu0 %249 }
  0x88   :  { %v265_v41 = vpop.permute.xlu1 %264  ;;  %v255_v42 = vpop.permute.xlu0 %254 }
  0xe2   :  { %v354_v25 = vpop.f32.mrf.mxu0  ;;  %v360_v26 = vpop.f32.mrf.mxu1 }
  0xe4   :  { %v355_v29 = vpop.f32.mrf.mxu0  ;;  %v361_v30 = vpop.f32.mrf.mxu1 }
  0xe5   :  { %v356_v31 = vadd.f32 %v355_v29, %v354_v25  ;;  %v362_v32 = vadd.f32 %v361_v30, %v360_v26 }
  0xe6   :  { %v357_v33 = vpop.f32.mrf.mxu0  ;;  %v363_v34 = vpop.f32.mrf.mxu1 }
  0xe7   :  { %v267_v37 = vadd.f32 %v356_v31, %v250_v28  ;;  %v269_v38 = vadd.f32 %v362_v32, %v260_v27 }
  0xe8   :  { %v358_v35 = vpop.f32.mrf.mxu0  ;;  %v364_v36 = vpop.f32.mrf.mxu1 }
  0xe9   :  { %v359_v39 = vadd.f32 %v358_v35, %v357_v33  ;;  %v365_v40 = vadd.f32 %v364_v36, %v363_v34  ;;  %v271_v45 = vmax.f32 %v267_v37, 0.0  ;;  %v273_v46 = vmax.f32 %v269_v38, 0.0 }
  0xeb   :  { %v268_v43 = vadd.f32 %v359_v39, %v255_v42  ;;  %v270_v44 = vadd.f32 %v365_v40, %v265_v41 }
  0xed   :  { %v272_v47 = vmax.f32 %v268_v43, 0.0  ;;  %v274_v48 = vmax.f32 %v270_v44, 0.0 }
  0xef   :  { %v330_v49 = vpack.c.bf16 %v272_v47, %v271_v45  ;;  %v335_v50 = vpack.c.bf16 %v274_v48, %v273_v46 }
  0xf1   :  { %331 = vst [vmem:[%s509_s3] sm:$0xff] %v330_v49   ;;  %337 = vst [vmem:[%s509_s3 + $0x8] sm:$0xff] %v335_v50  }

// kernel: forward.9
= control target key start
LH: loop header
LB: loop body
LE: loop exit
PB: predicated region body
PF: predicated region fallthrough
CT: control target
= control target key end

     0   :  { %s1043_s12 = smov 0   ;;  %s1045_s13 = smov 0   ;;  %s1159_s0 = inlined_call_operand.vmem [shape: bf16[16,1536], index: 0, kind: input, shape index: {}]   ;;  %s1160_s1 = inlined_call_operand.vmem [shape: bf16[1536,128], index: 1, kind: input, shape index: {}]   ;;  %s1161_s2 = inlined_call_operand.vmem [shape: f32[1,128], index: 2, kind: input, shape index: {}]   ;;  %s1162_s3 = inlined_call_operand.vmem [shape: f32[16,128], index: 3, kind: output, shape index: {}]  }
   0x1   :  { %s1047_s14 = smov 0   ;;  %s1049_s15 = smov 0  }
   0x2   :  { %s1051_s16 = smov 0  }
   0x3 LB: > { %s25_s17 = sadd.s32 1, %s1016_s15  ;;  %p48_p1 = scmp.ne.s32.totalorder %s1008_s13, %s1004_s12  ;;  %s1020_s16 = sphi %s1051_s16, %s13_s16   ;;  %s1016_s15 = sphi %s1049_s15, %s1166_s15   ;;  %s1012_s14 = sphi %s1047_s14, %s1165_s14   ;;  %s1008_s13 = sphi %s1045_s13, %s1164_s13   ;;  %s1004_s12 = sphi %s1043_s12, %s1163_s12  }
   0x4   : > { %p26_p0 = scmp.ge.s32.totalorder %s25_s17, 3  ;;  %p49_p2 = scmp.eq.s32.totalorder %s1020_s16, 0 }
   0x5   : > { %s41_s19 = sadd.s32 1, %s1008_s13  ;;  %p797_p5 = scmp.ge.s32.totalorder %s1020_s16, 3 }
   0x6   : > { %s1168_s17 = smov (%p26_p0, %s25_s17), 0  ;;  %p50_p3 = por %p49_p2, %p48_p1 }
   0x7   : > { %s37_s18 = ssub.s32 %s1016_s15, %s1168_s17  ;;  %162 = sbr.rel (%p797_p5) target bundleno = 18 (0x12), region = 20 }
   0x8   : > { %p39_p4 = scmp.eq.s32.totalorder %s37_s18, 0 }
   0xa   : > { %s1078_s20 = scalar_select %p39_p4, %s1008_s13, %s41_s19  }
   0xc   : > { %165 = sbr.rel (!%p50_p3) target bundleno = 18 (0x12), region = 24  ;;  %s167_s21 = sand.u32 (%p50_p3), 1, %s1008_s13  }
   0xd   : > { %s850_s22 = sshll.u32 (%p50_p3), %s1016_s15, 4  ;;  %s798_s23 = sshll.u32 (%p50_p3), %s167_s21, 5 }
   0xe   : > { %s175_s26 = scalar_lea.vmem (%p50_p3), %s1159_s0, %s850_s22  ;;  %s169_s27 = scalar_lea.vmem (%p50_p3), [#allocation3], %s798_s23 }
   0xf   : > { %v188_v0 = vld [vmem:[%s175_s26] sm:$0xff] (%p50_p3)  ;;  %v190_v1 = vld [vmem:[%s175_s26 + $0x8] sm:$0xff] (%p50_p3)  ;;  %v192_v2 = vld [vmem:[%s175_s26 + $0x30] sm:$0xff] (%p50_p3) }
  0x10   : > { %189 = vst [vmem:[%s169_s27] sm:$0xff] (%p50_p3), %v188_v0  ;;  %191 = vst [vmem:[%s169_s27 + $0x8] sm:$0xff] (%p50_p3), %v190_v1  ;;  %v194_v3 = vld [vmem:[%s175_s26 + $0x38] sm:$0xff] (%p50_p3) }
  0x11   : > { %193 = vst [vmem:[%s169_s27 + $0x10] sm:$0xff] %v192_v2  ;;  %195 = vst [vmem:[%s169_s27 + $0x18] sm:$0xff] %v194_v3 }
  0x12 PF: > { %p801_p6 = scmp.ge.s32.totalorder %s1020_s16, 1  ;;  %p212_p7 = scmp.lt.s32.totalorder %s1020_s16, 4 }
  0x14   : > { %p213_p8 = pnand %p801_p6, %p212_p7 }
  0x15   : > { %s219_s28 = sand.u32 (!%p213_p8), 1, %s1004_s12   ;;  %s803_s29 = sshll.u32 (!%p213_p8), %s1012_s14, 6 }
  0x16   : > { %216 = sbr.rel (%p213_p8) target bundleno = 317 (0x13d), region = 51  ;;  %s802_s30 = sshll.u32 (!%p213_p8), %s219_s28, 5 }
  0x17   : > { %p259_p9 = scmp.lt.s32.totalorder (!%p213_p8), %s803_s29, 191  ;;  %s1095_s8 = scalar_lea.vmem (!%p213_p8), [#allocation3], %s802_s30 }
  0x18   : > { %p805_p10 = scmp.ne.s32.totalorder (!%p213_p8), %s1012_s14, 0 }
  0x1b   : > { %s1170_s29 = smov (!%p259_p9, %s803_s29), 191  ;;  %283 = sbr.rel (%p805_p10) target bundleno = 34 (0x22), region = 59 }
  0x1c   : > { %s804_s4 = sshll.u32 %s1170_s29, 2 }
  0x1d   : > { %s1093_s7 = scalar_lea.vmem %s1160_s1, %s804_s4 }
  0x20   : > { %v1022_v4 = vmov 0.0  }
  0x21   : > { %284 = vst [vmem:[#allocation2] sm:$0xff] %v1022_v4  ;;  %285 = vst [vmem:[#allocation2 + $0x8] sm:$0xff] %v1022_v4 }
  0x22 PF: > { %v936_v5 = vld [vmem:[%s1093_s7 + $0x78] sm:$0xff]   ;;  %v940_v9 = vld [vmem:[%s1093_s7 + $0x70] sm:$0xff]   ;;  %v944_v13 = vld [vmem:[%s1093_s7 + $0x68] sm:$0xff]   ;;  %p842_p11 = scmp.ne.s32.totalorder %s1012_s14, 2 }
  0x23   : > { %v937_v6 = vld [vmem:[%s1093_s7 + $0xf8] sm:$0xff]   ;;  %851 = vmatprep.subr.bf16.mxu0 %v936_v5  ;;  %v941_v10 = vld [vmem:[%s1093_s7 + $0xf0] sm:$0xff]   ;;  %v945_v14 = vld [vmem:[%s1093_s7 + $0xe8] sm:$0xff]  }
  0x24   : > { %v938_v7 = vld [vmem:[%s1093_s7 + $0x38] sm:$0xff]   ;;  %873 = vmatprep.subr.bf16.mxu1 %v937_v6  ;;  %v942_v11 = vld [vmem:[%s1093_s7 + $0x30] sm:$0xff]   ;;  %v946_v15 = vld [vmem:[%s1093_s7 + $0x28] sm:$0xff]  }
  0x25   : > { %v939_v8 = vld [vmem:[%s1093_s7 + $0xb8] sm:$0xff]   ;;  %852 = vmatpush3.bf16.msra.mxu0 %v938_v7  ;;  %v943_v12 = vld [vmem:[%s1093_s7 + $0xb0] sm:$0xff]   ;;  %v947_v16 = vld [vmem:[%s1093_s7 + $0xa8] sm:$0xff]  }
  0x26   : > { %874 = vmatpush3.bf16.msra.mxu1 %v939_v8  ;;  %853 = vmatprep.subr.bf16.mxu0 %v940_v9  ;;  %v948_v17 = vld [vmem:[%s1093_s7 + $0x60] sm:$0xff]   ;;  %v952_v21 = vld [vmem:[%s1093_s7 + $0x58] sm:$0xff]   ;;  %v956_v25 = vld [vmem:[%s1093_s7 + $0x50] sm:$0xff]  }
  0x27   : > { %875 = vmatprep.subr.bf16.mxu1 %v941_v10  ;;  %v949_v18 = vld [vmem:[%s1093_s7 + $0xe0] sm:$0xff]   ;;  %v953_v22 = vld [vmem:[%s1093_s7 + $0xd8] sm:$0xff]   ;;  %v957_v26 = vld [vmem:[%s1093_s7 + $0xd0] sm:$0xff]  }
  0x28   : > { %v950_v19 = vld [vmem:[%s1093_s7 + $0x20] sm:$0xff]   ;;  %v954_v23 = vld [vmem:[%s1093_s7 + $0x18] sm:$0xff]   ;;  %v958_v27 = vld [vmem:[%s1093_s7 + $0x10] sm:$0xff]  }
  0x29   : > { %854 = vmatpush3.bf16.msra.mxu0 %v942_v11  ;;  %v951_v20 = vld [vmem:[%s1093_s7 + $0xa0] sm:$0xff]   ;;  %v955_v24 = vld [vmem:[%s1093_s7 + $0x98] sm:$0xff]   ;;  %v959_v28 = vld [vmem:[%s1093_s7 + $0x90] sm:$0xff]  }
  0x2a   : > { %876 = vmatpush3.bf16.msra.mxu1 %v943_v12  ;;  %855 = vmatprep.subr.bf16.mxu0 %v944_v13  ;;  %v960_v29 = vld [vmem:[%s1093_s7 + $0x48] sm:$0xff]   ;;  %v964_v33 = vld [vmem:[%s1093_s7 + $0x40] sm:$0xff]  }
  0x2b   : > { %877 = vmatprep.subr.bf16.mxu1 %v945_v14  ;;  %v961_v30 = vld [vmem:[%s1093_s7 + $0xc8] sm:$0xff]   ;;  %v965_v34 = vld [vmem:[%s1093_s7 + $0xc0] sm:$0xff]  }
  0x2c   : > { %v962_v31 = vld [vmem:[%s1093_s7 + $0x8] sm:$0xff]   ;;  %v966_v35 = vld [vmem:[%s1093_s7] sm:$0xff]  }
  0x2d   : > { %856 = vmatpush3.bf16.msra.mxu0 %v946_v15  ;;  %v963_v32 = vld [vmem:[%s1093_s7 + $0x88] sm:$0xff]   ;;  %v967_v36 = vld [vmem:[%s1093_s7 + $0x80] sm:$0xff]  }
  0x2e   : > { %878 = vmatpush3.bf16.msra.mxu1 %v947_v16  ;;  %857 = vmatprep.subr.bf16.mxu0 %v948_v17  ;;  %v968_v37 = vld [vmem:[%s1095_s8] ss:$16 sps:$4 sm:$0xff]   ;;  %v970_v38 = vld [vmem:[%s1095_s8 + $0x4] ss:$16 sps:$4 sm:$0xff]   ;;  %v971_v39 = vld [vmem:[%s1095_s8 + $0x8] ss:$16 sps:$4 sm:$0xff]  }
  0x2f   : > { %879 = vmatprep.subr.bf16.mxu1 %v949_v18  ;;  %v973_v40 = vld [vmem:[%s1095_s8 + $0xc] ss:$16 sps:$4 sm:$0xff]   ;;  %600 = vmatprep.mubr.bf16.mxu0 %v970_v38  ;;  %v286_v48 = vld [vmem:[#allocation2] sm:$0xff] }
  0x30   : > { %641 = vmatprep.mubr.bf16.mxu1 %v973_v40  ;;  %v287_v56 = vld [vmem:[#allocation2 + $0x8] sm:$0xff] }
  0x31   : > { %858 = vmatpush3.bf16.msra.mxu0 %v950_v19 }
  0x32   : > { %880 = vmatpush3.bf16.msra.mxu1 %v951_v20  ;;  %859 = vmatprep.subr.bf16.mxu0 %v952_v21 }
  0x33   : > { %881 = vmatprep.subr.bf16.mxu1 %v953_v22 }
  0x35   : > { %860 = vmatpush3.bf16.msra.mxu0 %v954_v23 }
  0x36   : > { %882 = vmatpush3.bf16.msra.mxu1 %v955_v24  ;;  %861 = vmatprep.subr.bf16.mxu0 %v956_v25 }
  0x37   : > { %883 = vmatprep.subr.bf16.mxu1 %v957_v26 }
  0x39   : > { %862 = vmatpush3.bf16.msra.mxu0 %v958_v27 }
  0x3a   : > { %884 = vmatpush3.bf16.msra.mxu1 %v959_v28  ;;  %863 = vmatprep.subr.bf16.mxu0 %v960_v29 }
  0x3b   : > { %885 = vmatprep.subr.bf16.mxu1 %v961_v30 }
  0x3d   : > { %864 = vmatpush3.bf16.msra.mxu0 %v962_v31 }
  0x3e   : > { %886 = vmatpush3.bf16.msra.mxu1 %v963_v32  ;;  %865 = vmatprep.subr.bf16.mxu0 %v964_v33 }
  0x3f   : > { %887 = vmatprep.subr.bf16.mxu1 %v965_v34 }
  0x41   : > { %866 = vmatpush3.bf16.msra.mxu0 %v966_v35 }
  0x42   : > { %888 = vmatpush3.bf16.msra.mxu1 %v967_v36 }
  0x44   : > { %601 = vmatmul.mubr.bf16.vlgmr.msra.gmra.mxu0 %v968_v37 }
  0x45   : > { %642 = vmatmul.mubr.bf16.vlgmr.msra.gmra.mxu1 %v971_v39 }
 0x104   : > { %v867_v41 = vpop.f32.mrf.mxu0 }
 0x105   : > { %v889_v42 = vpop.f32.mrf.mxu1 }
 0x106   : > { %v868_v43 = vpop.f32.mrf.mxu0 }
 0x107   : > { %v869_v44 = vadd.f32 %v868_v43, %v867_v41  ;;  %v890_v45 = vpop.f32.mrf.mxu1 }
 0x108   : > { %v891_v46 = vadd.f32 %v890_v45, %v889_v42  ;;  %v870_v47 = vpop.f32.mrf.mxu0 }
 0x109   : > { %v892_v49 = vpop.f32.mrf.mxu1 }
 0x10a   : > { %v644_v50 = vadd.f32 %v891_v46, %v869_v44  ;;  %v871_v51 = vpop.f32.mrf.mxu0 }
 0x10b   : > { %v872_v52 = vadd.f32 %v871_v51, %v870_v47  ;;  %v893_v53 = vpop.f32.mrf.mxu1 }
 0x10c   : > { %v650_v54 = vadd.f32 %v644_v50, %v286_v48  ;;  %v894_v55 = vadd.f32 %v893_v53, %v892_v49 }
 0x10e   : > { %652 = vst [vmem:[#allocation2] sm:$0xff] %v650_v54  ;;  %v647_v57 = vadd.f32 %v894_v55, %v872_v52  ;;  %657 = sbr.rel (%p842_p11) target bundleno = 317 (0x13d), region = 63 }
 0x110   : > { %v651_v58 = vadd.f32 %v647_v57, %v287_v56 }
 0x112   : > { %653 = vst [vmem:[#allocation2 + $0x8] sm:$0xff] %v651_v58 }
 0x113   : > { %v843_v60 = vld [vmem:[%s1161_s2] ss:$0 sm:$0xff] }
 0x115   : > { %v658_v59 = vld [vmem:[#allocation2] sm:$0xff] }
 0x116   : > { %v667_v62 = vadd.f32 %v843_v60, %v658_v59 }
 0x118   : > { %v844_v0 = vmul.f32 -1.442695, %v667_v62 }
 0x119   : > { %v659_v61 = vld [vmem:[#allocation2 + $0x8] sm:$0xff] }
 0x11a   : > { %v668_v63 = vadd.f32 %v843_v60, %v659_v61  ;;  %974 = vpow2.f32 %v844_v0 }
 0x11c   : > { %v845_v1 = vmul.f32 -1.442695, %v668_v63 }
 0x11e   : > { %976 = vpow2.f32 %v845_v1 }
 0x127   : > { %v975_v2 = vpop.eup %974 }
 0x128   : > { %v675_v4 = vadd.f32 1.0, %v975_v2 }
 0x12a   : > { %978 = vrcp.f32 %v675_v4 }
 0x12b   : > { %v977_v3 = vpop.eup %976 }
 0x12c   : > { %v676_v5 = vadd.f32 1.0, %v977_v3 }
 0x12e   : > { %980 = vrcp.f32 %v676_v5 }
 0x137   : > { %v979_v6 = vpop.eup %978 }
 0x138   : > { %681 = vst [vmem:[%s1162_s3] sm:$0xff] %v979_v6 }
 0x13b   : > { %v981_v7 = vpop.eup %980 }
 0x13c   : > { %682 = vst [vmem:[%s1162_s3 + $0x8] sm:$0xff] %v981_v7 }
 0x13d PF: > { %s13_s16 = sadd.s32 1, %s1020_s16   ;;  %s1163_s12 = smov %s1008_s13 }
 0x13e   : > { %p10_p12 = scmp.ge.s32.totalorder %s13_s16, 5   ;;  %s1164_s13 = smov %s1078_s20 }
 0x13f   : > { %s1165_s14 = smov %s1016_s15  ;;  %s1166_s15 = smov %s1168_s17 }
 0x140   :  { %12 = sbr.rel (!%p10_p12) target bundleno = 3 (0x3), region = 104 }

</bundles_post_ra>
